<compile_context>
chip_gen: v6e
topology: v6e:2x2x1
jax: 0.10.0
libtpu: 0.0.40
codegen_flags: <defaults>
</compile_context>

<pallas_src>
import jax
import jax.numpy as jnp
from jax import lax
from jax.experimental import pallas as pl
from jax.experimental.pallas import tpu as pltpu

# ---- hyperparameters, exactly as in the PyTorch script ----
text = 'hello world this is an example of word level text generation using RNN.'
words = text.split()
word_to_ix = {word: i for i, word in enumerate(set(words))}
vocab_size = len(word_to_ix)          # 13
embed_size = 16
hidden_size = 128
num_layers = 2

_SUBLANE = 8
_LANE = 128


def _round_up(x, m):
    return ((x + m - 1) // m) * m


def _rnn_kernel(xemb_ref,    # (T*Bp, E)  bf16  pre-gathered embeddings (time-major, flat)
                wih0_ref,    # (E, H)     bf16  W_ih0^T
                b0_ref,      # (1, H)     f32   b_ih0 + b_hh0
                hinit_ref,   # (L, Bp, H) f32   initial hidden state
                whh0_ref,    # (H, H)     bf16  W_hh0^T
                w1_ref,      # (2H, H)    bf16  [W_ih1^T ; W_hh1^T] fused (K=256)
                b1_ref,      # (1, H)     f32   b_ih1 + b_hh1
                wfc_ref,     # (H, Vp)    bf16  W_fc^T, lane-padded
                bfc_ref,     # (1, Vp)    f32   b_fc,   lane-padded
                out_ref,     # (T*Bp, Vp) f32   per-step logits (lane-dense)
                hout_ref,    # (L, Bp, H) f32   final hidden state
                xproj,       # VMEM scratch (T*Bp, H) f32: layer-0 input projection
                h1_all):     # VMEM scratch (T*Bp, H) f32: top-layer states, FC layout
    TB, H = xproj.shape
    Bp = hinit_ref.shape[1]
    T = TB // Bp
    bf16 = jnp.bfloat16

    # Time-independent layer-0 input projection for ALL (t, b) at once:
    # one batched (T*Bp, E) x (E, H) matmul, off the serial recurrence.
    xproj[...] = (jnp.dot(xemb_ref[...], wih0_ref[...],
                          preferred_element_type=jnp.float32)
                  + b0_ref[...])

    # Hoist the layer-1 bias broadcast out of the loop (no CSE of broadcasts).
    b1b = jnp.broadcast_to(b1_ref[...], (Bp, H))

    def step(t, carry):
        h0, h1 = carry                                   # f32 (Bp, H) each
        row = pl.multiple_of(t * Bp, Bp)
        xp = xproj[pl.ds(row, Bp), :]
        # h_t^{(0)} = tanh(xproj_t + h_{t-1}^{(0)} W_hh0^T)
        h0 = jnp.tanh(xp + jnp.dot(h0.astype(bf16), whh0_ref[...],
                                   preferred_element_type=jnp.float32))
        # h_t^{(1)} = tanh([h_t^{(0)} ; h_{t-1}^{(1)}] [W_ih1^T ; W_hh1^T] + b1)
        # (K=256 fusion exactly fills the v6e/v7x MXU; on v5e two K=128 dots
        #  on separate MXUs would be slightly faster.)
        cat = jnp.concatenate([h0.astype(bf16), h1.astype(bf16)], axis=-1)
        h1 = jnp.tanh(jnp.dot(cat, w1_ref[...],
                              preferred_element_type=jnp.float32) + b1b)
        # Store directly in the FC layout -> no reshape/copy before the FC.
        h1_all[pl.ds(row, Bp), :] = h1
        return h0, h1

    h0, h1 = lax.fori_loop(0, T, step, (hinit_ref[0], hinit_ref[1]),
                           unroll=True)

    hout_ref[0] = h0
    hout_ref[1] = h1

    # Batched, lane-dense FC over all timesteps: one (T*Bp, H) x (H, Vp)
    # matmul, off the serial recurrence.
    out_ref[...] = (jnp.dot(h1_all[...].astype(bf16), wfc_ref[...],
                            preferred_element_type=jnp.float32)
                    + bfc_ref[...])


def char_rnn_forward(x_ids, hidden, params):
    """x_ids: (B, T) int32 token ids, hidden: (L, B, H) float32."""
    B, T = x_ids.shape
    E, H, L = embed_size, hidden_size, num_layers
    V = params['fc_w'].shape[0]
    Bp = _round_up(max(B, 1), _SUBLANE)     # pad batch to a full sublane group
    Vp = _round_up(max(V, 1), _LANE)        # pad vocab to a full lane group
    f32, bf16 = jnp.float32, jnp.bfloat16

    # ---- wrapper glue: embedding gather only (projection now in-kernel) ----
    x_emb = jnp.take(params['embedding'].astype(f32), x_ids, axis=0)       # (B,T,E)
    x_emb = jnp.transpose(x_emb, (1, 0, 2))                                # (T,B,E)
    x_emb = jnp.pad(x_emb, ((0, 0), (0, Bp - B), (0, 0)))                  # (T,Bp,E)
    x_emb = x_emb.reshape(T * Bp, E).astype(bf16)                          # (T*Bp,E)

    h_init = jnp.pad(hidden.astype(f32), ((0, 0), (0, Bp - B), (0, 0)))    # (L,Bp,H)

    wih0 = params['w_ih_l0'].T.astype(bf16)                                # (E,H)
    b0 = (params['b_ih_l0'] + params['b_hh_l0']).astype(f32)[None, :]      # (1,H)
    whh0 = params['w_hh_l0'].T.astype(bf16)                                # (H,H)
    w1 = jnp.concatenate([params['w_ih_l1'].T, params['w_hh_l1'].T],
                         axis=0).astype(bf16)                              # (2H,H)
    b1 = (params['b_ih_l1'] + params['b_hh_l1']).astype(f32)[None, :]      # (1,H)
    wfc = jnp.pad(params['fc_w'].T.astype(f32),
                  ((0, 0), (0, Vp - V))).astype(bf16)                      # (H,Vp)
    bfc = jnp.pad(params['fc_b'].astype(f32), (0, Vp - V))[None, :]        # (1,Vp)

    def const(shape):
        n = len(shape)
        return pl.BlockSpec(shape, lambda i, _n=n: (0,) * _n)

    grid_spec = pltpu.PrefetchScalarGridSpec(
        num_scalar_prefetch=0,
        grid=(1,),                              # single invocation, fully resident
        in_specs=[
            const((T * Bp, E)),                 # x_emb (flattened, time-major)
            const((E, H)),                      # W_ih0^T
            const((1, H)),                      # b0
            const((L, Bp, H)),                  # initial hidden
            const((H, H)),                      # W_hh0^T
            const((2 * H, H)),                  # fused [W_ih1^T ; W_hh1^T]
            const((1, H)),                      # b1
            const((H, Vp)),                     # W_fc^T (lane-padded)
            const((1, Vp)),                     # b_fc   (lane-padded)
        ],
        out_specs=(
            const((T * Bp, Vp)),                # per-step logits (lane-dense)
            const((L, Bp, H)),                  # final hidden
        ),
        scratch_shapes=[pltpu.VMEM((T * Bp, H), jnp.float32),   # xproj
                        pltpu.VMEM((T * Bp, H), jnp.float32)],  # h1_all
    )

    out_p, hout_p = pl.pallas_call(
        _rnn_kernel,
        out_shape=(
            jax.ShapeDtypeStruct((T * Bp, Vp), f32),
            jax.ShapeDtypeStruct((L, Bp, H), f32),
        ),
        grid_spec=grid_spec,
        compiler_params=pltpu.CompilerParams(
            dimension_semantics=("arbitrary",)),
    )(x_emb, wih0, b0, h_init, whh0, w1, b1, wfc, bfc)

    out = jnp.transpose(out_p.reshape(T, Bp, Vp)[:, :B, :V], (1, 0, 2))    # (B,T,V)
    hout = hout_p[:, :B, :]                                                # (L,B,H)
    return out, hout


def init_params(key):
    """Deterministic parameter init (PyTorch-like shapes; uniform(-1/sqrt(H), 1/sqrt(H)))."""
    ks = jax.random.split(key, 11)
    bound = 1.0 / (hidden_size ** 0.5)

    def u(k, shape):
        return jax.random.uniform(k, shape, jnp.float32, -bound, bound)

    return {
        'embedding': jax.random.normal(ks[0], (vocab_size, embed_size), jnp.float32),
        'w_ih_l0': u(ks[1], (hidden_size, embed_size)),
        'w_hh_l0': u(ks[2], (hidden_size, hidden_size)),
        'b_ih_l0': u(ks[3], (hidden_size,)),
        'b_hh_l0': u(ks[4], (hidden_size,)),
        'w_ih_l1': u(ks[5], (hidden_size, hidden_size)),
        'w_hh_l1': u(ks[6], (hidden_size, hidden_size)),
        'b_ih_l1': u(ks[7], (hidden_size,)),
        'b_hh_l1': u(ks[8], (hidden_size,)),
        'fc_w':    u(ks[9], (vocab_size, hidden_size)),
        'fc_b':    u(ks[10], (vocab_size,)),
    }


if __name__ == "__main__":
    key = jax.random.PRNGKey(0)
    pkey, xkey = jax.random.split(key)
    params = init_params(pkey)

    B, T = 2, 8
    x_ids = jax.random.randint(xkey, (B, T), 0, vocab_size, dtype=jnp.int32)
    hidden0 = jnp.zeros((num_layers, B, hidden_size), jnp.float32)  # init_hidden

    out, h_out = char_rnn_forward(x_ids, hidden0, params)
    jax.block_until_ready((out, h_out))

    assert out.shape == (B, T, vocab_size)
    assert h_out.shape == (num_layers, B, hidden_size)
    assert bool(jnp.all(jnp.isfinite(out))) and bool(jnp.all(jnp.isfinite(h_out)))
    print("KERNEL_OK")
</pallas_src>

<mosaic_0001>
module attributes {stable_mosaic.version = 11 : i64} {
  func.func @_rnn_kernel(%arg0: i32, %arg1: memref<64x16xbf16, #tpu.memory_space<vmem>>, %arg2: memref<16x128xbf16, #tpu.memory_space<vmem>>, %arg3: memref<1x128xf32, #tpu.memory_space<vmem>>, %arg4: memref<2x8x128xf32, #tpu.memory_space<vmem>>, %arg5: memref<128x128xbf16, #tpu.memory_space<vmem>>, %arg6: memref<256x128xbf16, #tpu.memory_space<vmem>>, %arg7: memref<1x128xf32, #tpu.memory_space<vmem>>, %arg8: memref<128x128xbf16, #tpu.memory_space<vmem>>, %arg9: memref<1x128xf32, #tpu.memory_space<vmem>>, %arg10: memref<64x128xf32, #tpu.memory_space<vmem>>, %arg11: memref<2x8x128xf32, #tpu.memory_space<vmem>>, %arg12: memref<64x128xf32, #tpu.memory_space<vmem>>, %arg13: memref<64x128xf32, #tpu.memory_space<vmem>>) attributes {dimension_semantics = [#tpu.dimension_semantics<arbitrary>], iteration_bounds = array<i64: 1>, scalar_prefetch = 0 : i64, scratch_operands = 2 : i64, tpu.core_type = #tpu.core_type<tc>, window_params = [{pipeline_mode = #tpu.pipeline_mode<synchronous>, transform_indices = @transform_0, window_bounds = array<i64: 64, 16>}, {pipeline_mode = #tpu.pipeline_mode<synchronous>, transform_indices = @transform_1, window_bounds = array<i64: 16, 128>}, {pipeline_mode = #tpu.pipeline_mode<synchronous>, transform_indices = @transform_2, window_bounds = array<i64: 1, 128>}, {pipeline_mode = #tpu.pipeline_mode<synchronous>, transform_indices = @transform_3, window_bounds = array<i64: 2, 8, 128>}, {pipeline_mode = #tpu.pipeline_mode<synchronous>, transform_indices = @transform_4, window_bounds = array<i64: 128, 128>}, {pipeline_mode = #tpu.pipeline_mode<synchronous>, transform_indices = @transform_5, window_bounds = array<i64: 256, 128>}, {pipeline_mode = #tpu.pipeline_mode<synchronous>, transform_indices = @transform_6, window_bounds = array<i64: 1, 128>}, {pipeline_mode = #tpu.pipeline_mode<synchronous>, transform_indices = @transform_7, window_bounds = array<i64: 128, 128>}, {pipeline_mode = #tpu.pipeline_mode<synchronous>, transform_indices = @transform_8, window_bounds = array<i64: 1, 128>}, {pipeline_mode = #tpu.pipeline_mode<synchronous>, transform_indices = @transform_9, window_bounds = array<i64: 64, 128>}, {pipeline_mode = #tpu.pipeline_mode<synchronous>, transform_indices = @transform_10, window_bounds = array<i64: 2, 8, 128>}]} {
    %c0 = arith.constant 0 : index
    %c0_0 = arith.constant 0 : index
    %0 = vector.load %arg1[%c0, %c0_0] : memref<64x16xbf16, #tpu.memory_space<vmem>>, vector<64x16xbf16>
    %c0_1 = arith.constant 0 : index
    %c0_2 = arith.constant 0 : index
    %1 = vector.load %arg2[%c0_1, %c0_2] : memref<16x128xbf16, #tpu.memory_space<vmem>>, vector<16x128xbf16>
    %cst = arith.constant dense<0.000000e+00> : vector<64x128xf32>
    %2 = tpu.matmul %0, %1, %cst {dimension_numbers = #tpu.dot_dimension_numbers<[1], [0], [0], [1], [0, 0, 1, 1], [], []>} : vector<64x16xbf16>, vector<16x128xbf16>, vector<64x128xf32> -> vector<64x128xf32>
    %c0_3 = arith.constant 0 : index
    %c0_4 = arith.constant 0 : index
    %3 = vector.load %arg3[%c0_3, %c0_4] : memref<1x128xf32, #tpu.memory_space<vmem>>, vector<1x128xf32>
    %4 = vector.broadcast %3 : vector<1x128xf32> to vector<64x128xf32>
    %5 = arith.addf %2, %4 : vector<64x128xf32>
    %c0_5 = arith.constant 0 : index
    %c0_6 = arith.constant 0 : index
    %6 = vector.load %arg12[%c0_5, %c0_6] : memref<64x128xf32, #tpu.memory_space<vmem>>, vector<64x128xf32>
    tpu.vector_store %arg12[%c0_5, %c0_6], %5 {strides = array<i32>} : memref<64x128xf32, #tpu.memory_space<vmem>>, vector<64x128xf32>,
    %c0_7 = arith.constant 0 : index
    %c0_8 = arith.constant 0 : index
    %7 = vector.load %arg7[%c0_7, %c0_8] : memref<1x128xf32, #tpu.memory_space<vmem>>, vector<1x128xf32>
    %8 = vector.shape_cast %7 : vector<1x128xf32> to vector<1x128xf32>
    %9 = vector.broadcast %8 : vector<1x128xf32> to vector<8x128xf32>
    %c0_9 = arith.constant 0 : index
    %c0_10 = arith.constant 0 : index
    %c0_11 = arith.constant 0 : index
    %10 = vector.load %arg4[%c0_9, %c0_10, %c0_11] : memref<2x8x128xf32, #tpu.memory_space<vmem>>, vector<1x8x128xf32>
    %11 = vector.shape_cast %10 : vector<1x8x128xf32> to vector<8x128xf32>
    %c1 = arith.constant 1 : index
    %c0_12 = arith.constant 0 : index
    %c0_13 = arith.constant 0 : index
    %12 = vector.load %arg4[%c1, %c0_12, %c0_13] : memref<2x8x128xf32, #tpu.memory_space<vmem>>, vector<1x8x128xf32>
    %13 = vector.shape_cast %12 : vector<1x8x128xf32> to vector<8x128xf32>
    %c0_i32 = arith.constant 0 : i32
    %c8_i32 = arith.constant 8 : i32
    %14 = arith.muli %c0_i32, %c8_i32 : i32
    %15 = tpu.assume_multiple %14, 8 : i32
    %16 = arith.index_cast %15 : i32 to index
    %c0_14 = arith.constant 0 : index
    %17 = vector.load %arg12[%16, %c0_14] : memref<64x128xf32, #tpu.memory_space<vmem>>, vector<8x128xf32>
    %18 = arith.truncf %11 : vector<8x128xf32> to vector<8x128xbf16>
    %c0_15 = arith.constant 0 : index
    %c0_16 = arith.constant 0 : index
    %19 = vector.load %arg5[%c0_15, %c0_16] : memref<128x128xbf16, #tpu.memory_space<vmem>>, vector<128x128xbf16>
    %cst_17 = arith.constant dense<0.000000e+00> : vector<8x128xf32>
    %20 = tpu.matmul %18, %19, %cst_17 {dimension_numbers = #tpu.dot_dimension_numbers<[1], [0], [0], [1], [0, 0, 1, 1], [], []>} : vector<8x128xbf16>, vector<128x128xbf16>, vector<8x128xf32> -> vector<8x128xf32>
    %21 = arith.addf %17, %20 : vector<8x128xf32>
    %22 = math.tanh %21 : vector<8x128xf32>
    %23 = arith.truncf %22 : vector<8x128xf32> to vector<8x128xbf16>
    %24 = arith.truncf %13 : vector<8x128xf32> to vector<8x128xbf16>
    %25 = tpu.concatenate %23, %24 in 1 : vector<8x128xbf16>, vector<8x128xbf16> -> vector<8x256xbf16>
    %c0_18 = arith.constant 0 : index
    %c0_19 = arith.constant 0 : index
    %26 = vector.load %arg6[%c0_18, %c0_19] : memref<256x128xbf16, #tpu.memory_space<vmem>>, vector<256x128xbf16>
    %cst_20 = arith.constant dense<0.000000e+00> : vector<8x128xf32>
    %27 = tpu.matmul %25, %26, %cst_20 {dimension_numbers = #tpu.dot_dimension_numbers<[1], [0], [0], [1], [0, 0, 1, 1], [], []>} : vector<8x256xbf16>, vector<256x128xbf16>, vector<8x128xf32> -> vector<8x128xf32>
    %28 = arith.addf %27, %9 : vector<8x128xf32>
    %29 = math.tanh %28 : vector<8x128xf32>
    %30 = arith.index_cast %15 : i32 to index
    %c0_21 = arith.constant 0 : index
    %31 = vector.load %arg13[%30, %c0_21] : memref<64x128xf32, #tpu.memory_space<vmem>>, vector<8x128xf32>
    tpu.vector_store %arg13[%30, %c0_21], %29 {strides = array<i32>} : memref<64x128xf32, #tpu.memory_space<vmem>>, vector<8x128xf32>,
    %c1_i32 = arith.constant 1 : i32
    %c8_i32_22 = arith.constant 8 : i32
    %32 = arith.muli %c1_i32, %c8_i32_22 : i32
    %33 = tpu.assume_multiple %32, 8 : i32
    %34 = arith.index_cast %33 : i32 to index
    %c0_23 = arith.constant 0 : index
    %35 = vector.load %arg12[%34, %c0_23] : memref<64x128xf32, #tpu.memory_space<vmem>>, vector<8x128xf32>
    %36 = arith.truncf %22 : vector<8x128xf32> to vector<8x128xbf16>
    %c0_24 = arith.constant 0 : index
    %c0_25 = arith.constant 0 : index
    %37 = vector.load %arg5[%c0_24, %c0_25] : memref<128x128xbf16, #tpu.memory_space<vmem>>, vector<128x128xbf16>
    %cst_26 = arith.constant dense<0.000000e+00> : vector<8x128xf32>
    %38 = tpu.matmul %36, %37, %cst_26 {dimension_numbers = #tpu.dot_dimension_numbers<[1], [0], [0], [1], [0, 0, 1, 1], [], []>} : vector<8x128xbf16>, vector<128x128xbf16>, vector<8x128xf32> -> vector<8x128xf32>
    %39 = arith.addf %35, %38 : vector<8x128xf32>
    %40 = math.tanh %39 : vector<8x128xf32>
    %41 = arith.truncf %40 : vector<8x128xf32> to vector<8x128xbf16>
    %42 = arith.truncf %29 : vector<8x128xf32> to vector<8x128xbf16>
    %43 = tpu.concatenate %41, %42 in 1 : vector<8x128xbf16>, vector<8x128xbf16> -> vector<8x256xbf16>
    %c0_27 = arith.constant 0 : index
    %c0_28 = arith.constant 0 : index
    %44 = vector.load %arg6[%c0_27, %c0_28] : memref<256x128xbf16, #tpu.memory_space<vmem>>, vector<256x128xbf16>
    %cst_29 = arith.constant dense<0.000000e+00> : vector<8x128xf32>
    %45 = tpu.matmul %43, %44, %cst_29 {dimension_numbers = #tpu.dot_dimension_numbers<[1], [0], [0], [1], [0, 0, 1, 1], [], []>} : vector<8x256xbf16>, vector<256x128xbf16>, vector<8x128xf32> -> vector<8x128xf32>
    %46 = arith.addf %45, %9 : vector<8x128xf32>
    %47 = math.tanh %46 : vector<8x128xf32>
    %48 = arith.index_cast %33 : i32 to index
    %c0_30 = arith.constant 0 : index
    %49 = vector.load %arg13[%48, %c0_30] : memref<64x128xf32, #tpu.memory_space<vmem>>, vector<8x128xf32>
    tpu.vector_store %arg13[%48, %c0_30], %47 {strides = array<i32>} : memref<64x128xf32, #tpu.memory_space<vmem>>, vector<8x128xf32>,
    %c2_i32 = arith.constant 2 : i32
    %c8_i32_31 = arith.constant 8 : i32
    %50 = arith.muli %c2_i32, %c8_i32_31 : i32
    %51 = tpu.assume_multiple %50, 8 : i32
    %52 = arith.index_cast %51 : i32 to index
    %c0_32 = arith.constant 0 : index
    %53 = vector.load %arg12[%52, %c0_32] : memref<64x128xf32, #tpu.memory_space<vmem>>, vector<8x128xf32>
    %54 = arith.truncf %40 : vector<8x128xf32> to vector<8x128xbf16>
    %c0_33 = arith.constant 0 : index
    %c0_34 = arith.constant 0 : index
    %55 = vector.load %arg5[%c0_33, %c0_34] : memref<128x128xbf16, #tpu.memory_space<vmem>>, vector<128x128xbf16>
    %cst_35 = arith.constant dense<0.000000e+00> : vector<8x128xf32>
    %56 = tpu.matmul %54, %55, %cst_35 {dimension_numbers = #tpu.dot_dimension_numbers<[1], [0], [0], [1], [0, 0, 1, 1], [], []>} : vector<8x128xbf16>, vector<128x128xbf16>, vector<8x128xf32> -> vector<8x128xf32>
    %57 = arith.addf %53, %56 : vector<8x128xf32>
    %58 = math.tanh %57 : vector<8x128xf32>
    %59 = arith.truncf %58 : vector<8x128xf32> to vector<8x128xbf16>
    %60 = arith.truncf %47 : vector<8x128xf32> to vector<8x128xbf16>
    %61 = tpu.concatenate %59, %60 in 1 : vector<8x128xbf16>, vector<8x128xbf16> -> vector<8x256xbf16>
    %c0_36 = arith.constant 0 : index
    %c0_37 = arith.constant 0 : index
    %62 = vector.load %arg6[%c0_36, %c0_37] : memref<256x128xbf16, #tpu.memory_space<vmem>>, vector<256x128xbf16>
    %cst_38 = arith.constant dense<0.000000e+00> : vector<8x128xf32>
    %63 = tpu.matmul %61, %62, %cst_38 {dimension_numbers = #tpu.dot_dimension_numbers<[1], [0], [0], [1], [0, 0, 1, 1], [], []>} : vector<8x256xbf16>, vector<256x128xbf16>, vector<8x128xf32> -> vector<8x128xf32>
    %64 = arith.addf %63, %9 : vector<8x128xf32>
    %65 = math.tanh %64 : vector<8x128xf32>
    %66 = arith.index_cast %51 : i32 to index
    %c0_39 = arith.constant 0 : index
    %67 = vector.load %arg13[%66, %c0_39] : memref<64x128xf32, #tpu.memory_space<vmem>>, vector<8x128xf32>
    tpu.vector_store %arg13[%66, %c0_39], %65 {strides = array<i32>} : memref<64x128xf32, #tpu.memory_space<vmem>>, vector<8x128xf32>,
    %c3_i32 = arith.constant 3 : i32
    %c8_i32_40 = arith.constant 8 : i32
    %68 = arith.muli %c3_i32, %c8_i32_40 : i32
    %69 = tpu.assume_multiple %68, 8 : i32
    %70 = arith.index_cast %69 : i32 to index
    %c0_41 = arith.constant 0 : index
    %71 = vector.load %arg12[%70, %c0_41] : memref<64x128xf32, #tpu.memory_space<vmem>>, vector<8x128xf32>
    %72 = arith.truncf %58 : vector<8x128xf32> to vector<8x128xbf16>
    %c0_42 = arith.constant 0 : index
    %c0_43 = arith.constant 0 : index
    %73 = vector.load %arg5[%c0_42, %c0_43] : memref<128x128xbf16, #tpu.memory_space<vmem>>, vector<128x128xbf16>
    %cst_44 = arith.constant dense<0.000000e+00> : vector<8x128xf32>
    %74 = tpu.matmul %72, %73, %cst_44 {dimension_numbers = #tpu.dot_dimension_numbers<[1], [0], [0], [1], [0, 0, 1, 1], [], []>} : vector<8x128xbf16>, vector<128x128xbf16>, vector<8x128xf32> -> vector<8x128xf32>
    %75 = arith.addf %71, %74 : vector<8x128xf32>
    %76 = math.tanh %75 : vector<8x128xf32>
    %77 = arith.truncf %76 : vector<8x128xf32> to vector<8x128xbf16>
    %78 = arith.truncf %65 : vector<8x128xf32> to vector<8x128xbf16>
    %79 = tpu.concatenate %77, %78 in 1 : vector<8x128xbf16>, vector<8x128xbf16> -> vector<8x256xbf16>
    %c0_45 = arith.constant 0 : index
    %c0_46 = arith.constant 0 : index
    %80 = vector.load %arg6[%c0_45, %c0_46] : memref<256x128xbf16, #tpu.memory_space<vmem>>, vector<256x128xbf16>
    %cst_47 = arith.constant dense<0.000000e+00> : vector<8x128xf32>
    %81 = tpu.matmul %79, %80, %cst_47 {dimension_numbers = #tpu.dot_dimension_numbers<[1], [0], [0], [1], [0, 0, 1, 1], [], []>} : vector<8x256xbf16>, vector<256x128xbf16>, vector<8x128xf32> -> vector<8x128xf32>
    %82 = arith.addf %81, %9 : vector<8x128xf32>
    %83 = math.tanh %82 : vector<8x128xf32>
    %84 = arith.index_cast %69 : i32 to index
    %c0_48 = arith.constant 0 : index
    %85 = vector.load %arg13[%84, %c0_48] : memref<64x128xf32, #tpu.memory_space<vmem>>, vector<8x128xf32>
    tpu.vector_store %arg13[%84, %c0_48], %83 {strides = array<i32>} : memref<64x128xf32, #tpu.memory_space<vmem>>, vector<8x128xf32>,
    %c4_i32 = arith.constant 4 : i32
    %c8_i32_49 = arith.constant 8 : i32
    %86 = arith.muli %c4_i32, %c8_i32_49 : i32
    %87 = tpu.assume_multiple %86, 8 : i32
    %88 = arith.index_cast %87 : i32 to index
    %c0_50 = arith.constant 0 : index
    %89 = vector.load %arg12[%88, %c0_50] : memref<64x128xf32, #tpu.memory_space<vmem>>, vector<8x128xf32>
    %90 = arith.truncf %76 : vector<8x128xf32> to vector<8x128xbf16>
    %c0_51 = arith.constant 0 : index
    %c0_52 = arith.constant 0 : index
    %91 = vector.load %arg5[%c0_51, %c0_52] : memref<128x128xbf16, #tpu.memory_space<vmem>>, vector<128x128xbf16>
    %cst_53 = arith.constant dense<0.000000e+00> : vector<8x128xf32>
    %92 = tpu.matmul %90, %91, %cst_53 {dimension_numbers = #tpu.dot_dimension_numbers<[1], [0], [0], [1], [0, 0, 1, 1], [], []>} : vector<8x128xbf16>, vector<128x128xbf16>, vector<8x128xf32> -> vector<8x128xf32>
    %93 = arith.addf %89, %92 : vector<8x128xf32>
    %94 = math.tanh %93 : vector<8x128xf32>
    %95 = arith.truncf %94 : vector<8x128xf32> to vector<8x128xbf16>
    %96 = arith.truncf %83 : vector<8x128xf32> to vector<8x128xbf16>
    %97 = tpu.concatenate %95, %96 in 1 : vector<8x128xbf16>, vector<8x128xbf16> -> vector<8x256xbf16>
    %c0_54 = arith.constant 0 : index
    %c0_55 = arith.constant 0 : index
    %98 = vector.load %arg6[%c0_54, %c0_55] : memref<256x128xbf16, #tpu.memory_space<vmem>>, vector<256x128xbf16>
    %cst_56 = arith.constant dense<0.000000e+00> : vector<8x128xf32>
    %99 = tpu.matmul %97, %98, %cst_56 {dimension_numbers = #tpu.dot_dimension_numbers<[1], [0], [0], [1], [0, 0, 1, 1], [], []>} : vector<8x256xbf16>, vector<256x128xbf16>, vector<8x128xf32> -> vector<8x128xf32>
    %100 = arith.addf %99, %9 : vector<8x128xf32>
    %101 = math.tanh %100 : vector<8x128xf32>
    %102 = arith.index_cast %87 : i32 to index
    %c0_57 = arith.constant 0 : index
    %103 = vector.load %arg13[%102, %c0_57] : memref<64x128xf32, #tpu.memory_space<vmem>>, vector<8x128xf32>
    tpu.vector_store %arg13[%102, %c0_57], %101 {strides = array<i32>} : memref<64x128xf32, #tpu.memory_space<vmem>>, vector<8x128xf32>,
    %c5_i32 = arith.constant 5 : i32
    %c8_i32_58 = arith.constant 8 : i32
    %104 = arith.muli %c5_i32, %c8_i32_58 : i32
    %105 = tpu.assume_multiple %104, 8 : i32
    %106 = arith.index_cast %105 : i32 to index
    %c0_59 = arith.constant 0 : index
    %107 = vector.load %arg12[%106, %c0_59] : memref<64x128xf32, #tpu.memory_space<vmem>>, vector<8x128xf32>
    %108 = arith.truncf %94 : vector<8x128xf32> to vector<8x128xbf16>
    %c0_60 = arith.constant 0 : index
    %c0_61 = arith.constant 0 : index
    %109 = vector.load %arg5[%c0_60, %c0_61] : memref<128x128xbf16, #tpu.memory_space<vmem>>, vector<128x128xbf16>
    %cst_62 = arith.constant dense<0.000000e+00> : vector<8x128xf32>
    %110 = tpu.matmul %108, %109, %cst_62 {dimension_numbers = #tpu.dot_dimension_numbers<[1], [0], [0], [1], [0, 0, 1, 1], [], []>} : vector<8x128xbf16>, vector<128x128xbf16>, vector<8x128xf32> -> vector<8x128xf32>
    %111 = arith.addf %107, %110 : vector<8x128xf32>
    %112 = math.tanh %111 : vector<8x128xf32>
    %113 = arith.truncf %112 : vector<8x128xf32> to vector<8x128xbf16>
    %114 = arith.truncf %101 : vector<8x128xf32> to vector<8x128xbf16>
    %115 = tpu.concatenate %113, %114 in 1 : vector<8x128xbf16>, vector<8x128xbf16> -> vector<8x256xbf16>
    %c0_63 = arith.constant 0 : index
    %c0_64 = arith.constant 0 : index
    %116 = vector.load %arg6[%c0_63, %c0_64] : memref<256x128xbf16, #tpu.memory_space<vmem>>, vector<256x128xbf16>
    %cst_65 = arith.constant dense<0.000000e+00> : vector<8x128xf32>
    %117 = tpu.matmul %115, %116, %cst_65 {dimension_numbers = #tpu.dot_dimension_numbers<[1], [0], [0], [1], [0, 0, 1, 1], [], []>} : vector<8x256xbf16>, vector<256x128xbf16>, vector<8x128xf32> -> vector<8x128xf32>
    %118 = arith.addf %117, %9 : vector<8x128xf32>
    %119 = math.tanh %118 : vector<8x128xf32>
    %120 = arith.index_cast %105 : i32 to index
    %c0_66 = arith.constant 0 : index
    %121 = vector.load %arg13[%120, %c0_66] : memref<64x128xf32, #tpu.memory_space<vmem>>, vector<8x128xf32>
    tpu.vector_store %arg13[%120, %c0_66], %119 {strides = array<i32>} : memref<64x128xf32, #tpu.memory_space<vmem>>, vector<8x128xf32>,
    %c6_i32 = arith.constant 6 : i32
    %c8_i32_67 = arith.constant 8 : i32
    %122 = arith.muli %c6_i32, %c8_i32_67 : i32
    %123 = tpu.assume_multiple %122, 8 : i32
    %124 = arith.index_cast %123 : i32 to index
    %c0_68 = arith.constant 0 : index
    %125 = vector.load %arg12[%124, %c0_68] : memref<64x128xf32, #tpu.memory_space<vmem>>, vector<8x128xf32>
    %126 = arith.truncf %112 : vector<8x128xf32> to vector<8x128xbf16>
    %c0_69 = arith.constant 0 : index
    %c0_70 = arith.constant 0 : index
    %127 = vector.load %arg5[%c0_69, %c0_70] : memref<128x128xbf16, #tpu.memory_space<vmem>>, vector<128x128xbf16>
    %cst_71 = arith.constant dense<0.000000e+00> : vector<8x128xf32>
    %128 = tpu.matmul %126, %127, %cst_71 {dimension_numbers = #tpu.dot_dimension_numbers<[1], [0], [0], [1], [0, 0, 1, 1], [], []>} : vector<8x128xbf16>, vector<128x128xbf16>, vector<8x128xf32> -> vector<8x128xf32>
    %129 = arith.addf %125, %128 : vector<8x128xf32>
    %130 = math.tanh %129 : vector<8x128xf32>
    %131 = arith.truncf %130 : vector<8x128xf32> to vector<8x128xbf16>
    %132 = arith.truncf %119 : vector<8x128xf32> to vector<8x128xbf16>
    %133 = tpu.concatenate %131, %132 in 1 : vector<8x128xbf16>, vector<8x128xbf16> -> vector<8x256xbf16>
    %c0_72 = arith.constant 0 : index
    %c0_73 = arith.constant 0 : index
    %134 = vector.load %arg6[%c0_72, %c0_73] : memref<256x128xbf16, #tpu.memory_space<vmem>>, vector<256x128xbf16>
    %cst_74 = arith.constant dense<0.000000e+00> : vector<8x128xf32>
    %135 = tpu.matmul %133, %134, %cst_74 {dimension_numbers = #tpu.dot_dimension_numbers<[1], [0], [0], [1], [0, 0, 1, 1], [], []>} : vector<8x256xbf16>, vector<256x128xbf16>, vector<8x128xf32> -> vector<8x128xf32>
    %136 = arith.addf %135, %9 : vector<8x128xf32>
    %137 = math.tanh %136 : vector<8x128xf32>
    %138 = arith.index_cast %123 : i32 to index
    %c0_75 = arith.constant 0 : index
    %139 = vector.load %arg13[%138, %c0_75] : memref<64x128xf32, #tpu.memory_space<vmem>>, vector<8x128xf32>
    tpu.vector_store %arg13[%138, %c0_75], %137 {strides = array<i32>} : memref<64x128xf32, #tpu.memory_space<vmem>>, vector<8x128xf32>,
    %c7_i32 = arith.constant 7 : i32
    %c8_i32_76 = arith.constant 8 : i32
    %140 = arith.muli %c7_i32, %c8_i32_76 : i32
    %141 = tpu.assume_multiple %140, 8 : i32
    %142 = arith.index_cast %141 : i32 to index
    %c0_77 = arith.constant 0 : index
    %143 = vector.load %arg12[%142, %c0_77] : memref<64x128xf32, #tpu.memory_space<vmem>>, vector<8x128xf32>
    %144 = arith.truncf %130 : vector<8x128xf32> to vector<8x128xbf16>
    %c0_78 = arith.constant 0 : index
    %c0_79 = arith.constant 0 : index
    %145 = vector.load %arg5[%c0_78, %c0_79] : memref<128x128xbf16, #tpu.memory_space<vmem>>, vector<128x128xbf16>
    %cst_80 = arith.constant dense<0.000000e+00> : vector<8x128xf32>
    %146 = tpu.matmul %144, %145, %cst_80 {dimension_numbers = #tpu.dot_dimension_numbers<[1], [0], [0], [1], [0, 0, 1, 1], [], []>} : vector<8x128xbf16>, vector<128x128xbf16>, vector<8x128xf32> -> vector<8x128xf32>
    %147 = arith.addf %143, %146 : vector<8x128xf32>
    %148 = math.tanh %147 : vector<8x128xf32>
    %149 = arith.truncf %148 : vector<8x128xf32> to vector<8x128xbf16>
    %150 = arith.truncf %137 : vector<8x128xf32> to vector<8x128xbf16>
    %151 = tpu.concatenate %149, %150 in 1 : vector<8x128xbf16>, vector<8x128xbf16> -> vector<8x256xbf16>
    %c0_81 = arith.constant 0 : index
    %c0_82 = arith.constant 0 : index
    %152 = vector.load %arg6[%c0_81, %c0_82] : memref<256x128xbf16, #tpu.memory_space<vmem>>, vector<256x128xbf16>
    %cst_83 = arith.constant dense<0.000000e+00> : vector<8x128xf32>
    %153 = tpu.matmul %151, %152, %cst_83 {dimension_numbers = #tpu.dot_dimension_numbers<[1], [0], [0], [1], [0, 0, 1, 1], [], []>} : vector<8x256xbf16>, vector<256x128xbf16>, vector<8x128xf32> -> vector<8x128xf32>
    %154 = arith.addf %153, %9 : vector<8x128xf32>
    %155 = math.tanh %154 : vector<8x128xf32>
    %156 = arith.index_cast %141 : i32 to index
    %c0_84 = arith.constant 0 : index
    %157 = vector.load %arg13[%156, %c0_84] : memref<64x128xf32, #tpu.memory_space<vmem>>, vector<8x128xf32>
    tpu.vector_store %arg13[%156, %c0_84], %155 {strides = array<i32>} : memref<64x128xf32, #tpu.memory_space<vmem>>, vector<8x128xf32>,
    %c8_i32_85 = arith.constant 8 : i32
    %c0_86 = arith.constant 0 : index
    %c0_87 = arith.constant 0 : index
    %c0_88 = arith.constant 0 : index
    %158 = vector.load %arg11[%c0_86, %c0_87, %c0_88] : memref<2x8x128xf32, #tpu.memory_space<vmem>>, vector<1x8x128xf32>
    %159 = vector.shape_cast %158 : vector<1x8x128xf32> to vector<8x128xf32>
    %160 = vector.shape_cast %148 : vector<8x128xf32> to vector<1x8x128xf32>
    tpu.vector_store %arg11[%c0_86, %c0_87, %c0_88], %160 {strides = array<i32>} : memref<2x8x128xf32, #tpu.memory_space<vmem>>, vector<1x8x128xf32>,
    %c1_89 = arith.constant 1 : index
    %c0_90 = arith.constant 0 : index
    %c0_91 = arith.constant 0 : index
    %161 = vector.load %arg11[%c1_89, %c0_90, %c0_91] : memref<2x8x128xf32, #tpu.memory_space<vmem>>, vector<1x8x128xf32>
    %162 = vector.shape_cast %161 : vector<1x8x128xf32> to vector<8x128xf32>
    %163 = vector.shape_cast %155 : vector<8x128xf32> to vector<1x8x128xf32>
    tpu.vector_store %arg11[%c1_89, %c0_90, %c0_91], %163 {strides = array<i32>} : memref<2x8x128xf32, #tpu.memory_space<vmem>>, vector<1x8x128xf32>,
    %c0_92 = arith.constant 0 : index
    %c0_93 = arith.constant 0 : index
    %164 = vector.load %arg13[%c0_92, %c0_93] : memref<64x128xf32, #tpu.memory_space<vmem>>, vector<64x128xf32>
    %165 = arith.truncf %164 : vector<64x128xf32> to vector<64x128xbf16>
    %c0_94 = arith.constant 0 : index
    %c0_95 = arith.constant 0 : index
    %166 = vector.load %arg8[%c0_94, %c0_95] : memref<128x128xbf16, #tpu.memory_space<vmem>>, vector<128x128xbf16>
    %cst_96 = arith.constant dense<0.000000e+00> : vector<64x128xf32>
    %167 = tpu.matmul %165, %166, %cst_96 {dimension_numbers = #tpu.dot_dimension_numbers<[1], [0], [0], [1], [0, 0, 1, 1], [], []>} : vector<64x128xbf16>, vector<128x128xbf16>, vector<64x128xf32> -> vector<64x128xf32>
    %c0_97 = arith.constant 0 : index
    %c0_98 = arith.constant 0 : index
    %168 = vector.load %arg9[%c0_97, %c0_98] : memref<1x128xf32, #tpu.memory_space<vmem>>, vector<1x128xf32>
    %169 = vector.broadcast %168 : vector<1x128xf32> to vector<64x128xf32>
    %170 = arith.addf %167, %169 : vector<64x128xf32>
    %c0_99 = arith.constant 0 : index
    %c0_100 = arith.constant 0 : index
    %171 = vector.load %arg10[%c0_99, %c0_100] : memref<64x128xf32, #tpu.memory_space<vmem>>, vector<64x128xf32>
    tpu.vector_store %arg10[%c0_99, %c0_100], %170 {strides = array<i32>} : memref<64x128xf32, #tpu.memory_space<vmem>>, vector<64x128xf32>,
    return
  }
  func.func @transform_0(%arg0: i32) -> (i32, i32) {
    %c0_i32 = arith.constant 0 : i32
    %c0_i32_0 = arith.constant 0 : i32
    %c0_i32_1 = arith.constant 0 : i32
    return %c0_i32, %c0_i32_0 : i32, i32
  }
  func.func @transform_1(%arg0: i32) -> (i32, i32) {
    %c0_i32 = arith.constant 0 : i32
    %c0_i32_0 = arith.constant 0 : i32
    %c0_i32_1 = arith.constant 0 : i32
    return %c0_i32, %c0_i32_0 : i32, i32
  }
  func.func @transform_2(%arg0: i32) -> (i32, i32) {
    %c0_i32 = arith.constant 0 : i32
    %c0_i32_0 = arith.constant 0 : i32
    %c0_i32_1 = arith.constant 0 : i32
    return %c0_i32, %c0_i32_0 : i32, i32
  }
  func.func @transform_3(%arg0: i32) -> (i32, i32, i32) {
    %c0_i32 = arith.constant 0 : i32
    %c0_i32_0 = arith.constant 0 : i32
    %c0_i32_1 = arith.constant 0 : i32
    %c0_i32_2 = arith.constant 0 : i32
    return %c0_i32, %c0_i32_0, %c0_i32_1 : i32, i32, i32
  }
  func.func @transform_4(%arg0: i32) -> (i32, i32) {
    %c0_i32 = arith.constant 0 : i32
    %c0_i32_0 = arith.constant 0 : i32
    %c0_i32_1 = arith.constant 0 : i32
    return %c0_i32, %c0_i32_0 : i32, i32
  }
  func.func @transform_5(%arg0: i32) -> (i32, i32) {
    %c0_i32 = arith.constant 0 : i32
    %c0_i32_0 = arith.constant 0 : i32
    %c0_i32_1 = arith.constant 0 : i32
    return %c0_i32, %c0_i32_0 : i32, i32
  }
  func.func @transform_6(%arg0: i32) -> (i32, i32) {
    %c0_i32 = arith.constant 0 : i32
    %c0_i32_0 = arith.constant 0 : i32
    %c0_i32_1 = arith.constant 0 : i32
    return %c0_i32, %c0_i32_0 : i32, i32
  }
  func.func @transform_7(%arg0: i32) -> (i32, i32) {
    %c0_i32 = arith.constant 0 : i32
    %c0_i32_0 = arith.constant 0 : i32
    %c0_i32_1 = arith.constant 0 : i32
    return %c0_i32, %c0_i32_0 : i32, i32
  }
  func.func @transform_8(%arg0: i32) -> (i32, i32) {
    %c0_i32 = arith.constant 0 : i32
    %c0_i32_0 = arith.constant 0 : i32
    %c0_i32_1 = arith.constant 0 : i32
    return %c0_i32, %c0_i32_0 : i32, i32
  }
  func.func @transform_9(%arg0: i32) -> (i32, i32) {
    %c0_i32 = arith.constant 0 : i32
    %c0_i32_0 = arith.constant 0 : i32
    %c0_i32_1 = arith.constant 0 : i32
    return %c0_i32, %c0_i32_0 : i32, i32
  }
  func.func @transform_10(%arg0: i32) -> (i32, i32, i32) {
    %c0_i32 = arith.constant 0 : i32
    %c0_i32_0 = arith.constant 0 : i32
    %c0_i32_1 = arith.constant 0 : i32
    %c0_i32_2 = arith.constant 0 : i32
    return %c0_i32, %c0_i32_0, %c0_i32_1 : i32, i32, i32
  }
}

</mosaic_0001>

<bundles_post_ra>
// kernel: tpu_custom_call.1
= control target key start
LH: loop header
LB: loop body
LE: loop exit
PB: predicated region body
PF: predicated region fallthrough
CT: control target
= control target key end

     0   :  { %16 = vsyncpa [#allocation5], 0  ;;  %s3946_s0 = inlined_call_operand.vmem [shape: bf16[64,16], index: 0, kind: input, shape index: {}]   ;;  %s3947_s1 = inlined_call_operand.vmem [shape: bf16[16,128], index: 1, kind: input, shape index: {}]   ;;  %s3948_s2 = inlined_call_operand.vmem [shape: f32[1,128], index: 2, kind: input, shape index: {}]   ;;  %s3949_s3 = inlined_call_operand.vmem [shape: f32[2,8,128], index: 3, kind: input, shape index: {}]   ;;  %s3950_s4 = inlined_call_operand.hbm [shape: bf16[128,128], index: 4, kind: input, shape index: {}]   ;;  %s3951_s5 = inlined_call_operand.hbm [shape: bf16[256,128], index: 5, kind: input, shape index: {}]   ;;  %s3952_s6 = inlined_call_operand.vmem [shape: f32[1,128], index: 6, kind: input, shape index: {}]   ;;  %s3953_s7 = inlined_call_operand.hbm [shape: bf16[128,128], index: 7, kind: input, shape index: {}]   ;;  %s3954_s8 = inlined_call_operand.vmem [shape: f32[1,128], index: 8, kind: input, shape index: {}]   ;;  %s3955_s9 = inlined_call_operand.hbm [shape: f32[64,128], index: 9, kind: output, shape index: {0}]   ;;  %s3956_s10 = inlined_call_operand.hbm [shape: f32[2,8,128], index: 10, kind: output, shape index: {1}]  }
   0x1   :  { %17 = vsyncpa [#allocation8], 0 }
   0x2   :  { %18 = vsyncpa [#allocation6], 0 }
   0x3   :  { %19 = vsyncpa [#allocation12], 0  ;;  %s3686_s13 = smov [#allocation7]   ;;  %s3687_s15 = smov [#allocation4]  }
   0x4   :  { %s45_s14 = sshll.u32 %s3686_s13, 4  ;;  %s33_s16 = sshll.u32 %s3687_s15, 4  ;;  %s46_s14 = int_to_ptr.vmem [resolvable:$true] %s45_s14  ;;  %s34_s16 = int_to_ptr.vmem [resolvable:$true] %s33_s16 }
   0x5   :  { %s3586_s17 = scalar_lea.vmem %s46_s14, 2048  ;;  %p3591_p1 = scmp.lt.s32.totalorder %s46_s14, %s46_s14 }
   0x6   :  { %p3587_p0 = scmp.ne.s32.totalorder %s46_s14, %s3586_s17  ;;  %p3592_p2 = scmp.lt.s32.totalorder %s3586_s17, %s3586_s17 }
   0x8   :  { %p3593_p3 = por %p3592_p2, %p3591_p1 }
   0xa   :  { %p3594_p4 = pnand %p3593_p3, %p3587_p0 }
   0xc   :  { %3597 = shalt.err (!%p3594_p4)
}
   0xd   :  { %s3688_s18 = smov 64   ;;  %s3689_s19 = smov 4  }
   0xe   :  { %51 = dma.hbm_to_vmem [thread:$0]  %s3951_s5, 2048, %s46_s14, [#allocation8], %s3688_s18, %s3688_s18, %s3689_s19  }
   0xf   :  { %s3606_s22 = scalar_lea.vmem %s34_s16, 1024  ;;  %p3611_p6 = scmp.lt.s32.totalorder %s34_s16, %s34_s16 }
  0x10   :  { %p3607_p5 = scmp.ne.s32.totalorder %s34_s16, %s3606_s22  ;;  %p3612_p7 = scmp.lt.s32.totalorder %s3606_s22, %s3606_s22 }
  0x12   :  { %p3613_p8 = por %p3612_p7, %p3611_p6 }
  0x14   :  { %p3614_p9 = pnand %p3613_p8, %p3607_p5 }
  0x16   :  { %3617 = shalt.err (!%p3614_p9)
}
  0x17   :  { %39 = dma.hbm_to_vmem [thread:$0]  %s3950_s4, 1024, %s34_s16, [#allocation5], %s3688_s18, %s3688_s18, %s3689_s19  }
  0x18   :  { %s3690_s25 = smov [#allocation9]  }
  0x19   :  { %s59_s26 = sshll.u32 %s3690_s25, 4  ;;  %s60_s26 = int_to_ptr.vmem [resolvable:$true] %s59_s26 }
  0x1a   :  { %s3626_s27 = scalar_lea.vmem %s60_s26, 1024  ;;  %p3631_p11 = scmp.lt.s32.totalorder %s60_s26, %s60_s26 }
  0x1b   :  { %p3627_p10 = scmp.ne.s32.totalorder %s60_s26, %s3626_s27  ;;  %p3632_p12 = scmp.lt.s32.totalorder %s3626_s27, %s3626_s27 }
  0x1d   :  { %p3633_p13 = por %p3632_p12, %p3631_p11 }
  0x1f   :  { %p3634_p0 = pnand %p3633_p13, %p3627_p10 }
  0x21   :  { %3637 = shalt.err (!%p3634_p0)
}
  0x22   :  { %65 = dma.hbm_to_vmem [thread:$0]  %s3953_s7, 1024, %s60_s26, [#allocation8], %s3688_s18, %s3688_s18, %s3689_s19  }
  0x23   :  { %3678 = dma.done.wait [#allocation5], 1024  }
  0x24   :  { %3679 = vsyncadd [#allocation5], 4294966272 }
  0x25   :  { %3680 = dma.done.wait [#allocation8], 3072  }
  0x26   :  { %3681 = vsyncadd [#allocation8], 4294964224  ;;  %v3691_v0 = vmov 0.0   ;;  %vm3692_vm0 = vmmov 0   ;;  %v3340_v1 = vld [vmem:[#allocation4 + $0x38] sm:$0xff]   ;;  %v3341_v2 = vld [vmem:[#allocation4 + $0x30] sm:$0xff]  }
  0x27   :  { %3145 = vmatprep.subr.bf16.mxu0 %v3691_v0  ;;  %3161 = vmatprep.mubr.msk.bf16.mxu0 %vm3692_vm0, %v3691_v0  ;;  %v3342_v3 = vld [vmem:[#allocation4 + $0x28] sm:$0xff]   ;;  %v3345_v4 = vld [vmem:[%s3947_s1] sm:$0xff]   ;;  %vm121_vm1 = vcmask 130048   ;;  %v3344_v8 = vld [vmem:[#allocation4 + $0x18] sm:$0xff]  }
  0x28   :  { %3146 = vmatpush3.bf16.msra.mxu0 %v3340_v1  ;;  %v3346_v5 = vld [vmem:[%s3946_s0] sm:$0xff]   ;;  %3135 = vmatprep.subr.bf16.mxu1 %v3345_v4  ;;  %v3348_v6 = vld [vmem:[%s3946_s0 + $0x8] sm:$0xff]   ;;  %v3353_v9 = vld [vmem:[#allocation4 + $0x38] sm:$0xff]  }
  0x29   :  { %3147 = vmatprep.subr.bf16.mxu0 %v3691_v0  ;;  %3136 = vmatpush3.bf16.msra.mxu1 %v3345_v4  ;;  %v3343_v7 = vld [vmem:[#allocation4 + $0x20] sm:$0xff]   ;;  %v3347_v10 = vld [vmem:[#allocation4 + $0x10] sm:$0xff]   ;;  %v3349_v11 = vld [vmem:[#allocation4 + $0x8] sm:$0xff]  }
  0x2a   :  { %3137 = vmatprep.mubr.msk.bf16.mxu1 %vm121_vm1, %v3346_v5  ;;  %3165 = vmatprep.subr.bf16.mxu1 %v3691_v0  ;;  %v3350_v12 = vld [vmem:[#allocation4] sm:$0xff]   ;;  %v3351_v14 = vld [vmem:[#allocation7 + $0x78] sm:$0xff]   ;;  %v3354_v17 = vld [vmem:[#allocation7 + $0x70] sm:$0xff]  }
  0x2b   :  { %v214_v13 = vld [vmem:[%s3949_s3] sm:$0xff]  ;;  %v3352_v15 = vld [vmem:[#allocation7 + $0x38] sm:$0xff]   ;;  %v3355_v18 = vld [vmem:[#allocation7 + $0x30] sm:$0xff]  }
  0x2c   :  { %3148 = vmatpush3.bf16.msra.mxu0 %v3341_v2  ;;  %3138 = vmatmul.mubr.msk.bf16.vlgmr.msra.gmra.mxu1 %vm121_vm1, %v3348_v6  ;;  %v218_v16 = vpack.c.bf16 %v214_v13, %v214_v13  ;;  %v3356_v19 = vld [vmem:[#allocation4 + $0x30] sm:$0xff]   ;;  %v3357_v20 = vld [vmem:[#allocation7 + $0x68] sm:$0xff]   ;;  %v3360_v23 = vld [vmem:[#allocation7 + $0x60] sm:$0xff]  }
  0x2d   :  { %3149 = vmatprep.subr.bf16.mxu0 %v3691_v0  ;;  %3166 = vmatpush3.bf16.msra.mxu1 %v3353_v9  ;;  %v3358_v21 = vld [vmem:[#allocation7 + $0x28] sm:$0xff]   ;;  %v3361_v24 = vld [vmem:[#allocation7 + $0x20] sm:$0xff]   ;;  %v3363_v26 = vld [vmem:[#allocation7 + $0x58] sm:$0xff]  }
  0x2e   :  { %3167 = vmatprep.subr.bf16.mxu1 %v3691_v0  ;;  %v3359_v22 = vld [vmem:[#allocation4 + $0x28] sm:$0xff]   ;;  %v3362_v25 = vld [vmem:[#allocation4 + $0x20] sm:$0xff]   ;;  %v3364_v27 = vld [vmem:[#allocation7 + $0x18] sm:$0xff]  }
  0x2f   :  { %v3365_v28 = vld [vmem:[#allocation4 + $0x18] sm:$0xff]   ;;  %v3366_v29 = vld [vmem:[#allocation7 + $0x50] sm:$0xff]   ;;  %v3371_v34 = vld [vmem:[#allocation7 + $0x48] sm:$0xff]  }
  0x30   :  { %3150 = vmatpush3.bf16.msra.mxu0 %v3342_v3  ;;  %v3367_v30 = vld [vmem:[#allocation7 + $0x10] sm:$0xff]   ;;  %v3370_v33 = vld [vmem:[%s3946_s0 + $0x18] sm:$0xff]   ;;  %v3372_v35 = vld [vmem:[#allocation7 + $0x8] sm:$0xff]  }
  0x31   :  { %3151 = vmatprep.subr.bf16.mxu0 %v3691_v0  ;;  %3168 = vmatpush3.bf16.msra.mxu1 %v3356_v19  ;;  %v3368_v31 = vld [vmem:[#allocation4 + $0x10] sm:$0xff]   ;;  %v3373_v36 = vld [vmem:[#allocation4 + $0x8] sm:$0xff]   ;;  %v3374_v37 = vld [vmem:[#allocation7 + $0x40] sm:$0xff]  }
  0x32   :  { %3169 = vmatprep.subr.bf16.mxu1 %v3691_v0  ;;  %v3369_v32 = vld [vmem:[%s3946_s0 + $0x10] sm:$0xff]   ;;  %v3375_v38 = vld [vmem:[#allocation7] sm:$0xff]   ;;  %v2668_v40 = vld [vmem:[%s3949_s3 + $0x8] sm:$0xff] }
  0x33   :  { %3141 = vmatprep.mubr.msk.bf16.mxu1 %vm121_vm1, %v3369_v32  ;;  %v3376_v39 = vld [vmem:[#allocation4] sm:$0xff]   ;;  %v326_v41 = vpack.c.bf16 %v2668_v40, %v2668_v40  ;;  %v3378_v42 = vld [vmem:[#allocation7 + $0x78] sm:$0xff]   ;;  %v3381_v56 = vld [vmem:[#allocation7 + $0x70] sm:$0xff]  }
  0x34   :  { %3152 = vmatpush3.bf16.msra.mxu0 %v3343_v7  ;;  %3142 = vmatmul.mubr.msk.bf16.gmra.mxu1 %vm121_vm1, %v3370_v33  ;;  %v3812_v44 = vld [vmem:[%s3948_s2] ss:$0 sm:$0xff]  ;;  %v3377_v53 = vld [vmem:[#allocation4 + $0x38] sm:$0xff]   ;;  %v3379_v57 = vld [vmem:[#allocation4 + $0x30] sm:$0xff]  }
  0x35   :  { %3153 = vmatprep.subr.bf16.mxu0 %v3691_v0  ;;  %3170 = vmatpush3.bf16.msra.mxu1 %v3359_v22  ;;  %v3380_v54 = vld [vmem:[#allocation7 + $0x38] sm:$0xff]   ;;  %v3383_v58 = vld [vmem:[#allocation7 + $0x30] sm:$0xff]   ;;  %v3382_v59 = vld [vmem:[#allocation4 + $0x28] sm:$0xff]  }
  0x36   :  { %3171 = vmatprep.subr.bf16.mxu1 %v3691_v0  ;;  %3181 = vmatprep.mubr.msk.bf16.mxu1 %vm3692_vm0, %v3691_v0  ;;  %v3384_v60 = vld [vmem:[#allocation7 + $0x68] sm:$0xff]   ;;  %v3385_v61 = vld [vmem:[#allocation4 + $0x20] sm:$0xff]   ;;  %v3388_v1 = vld [vmem:[#allocation4 + $0x18] sm:$0xff]  }
  0x37   :  { %v3386_v62 = vld [vmem:[#allocation7 + $0x28] sm:$0xff]   ;;  %v3387_v63 = vld [vmem:[#allocation7 + $0x60] sm:$0xff]   ;;  %v3390_v3 = vld [vmem:[#allocation7 + $0x58] sm:$0xff]  }
  0x38   :  { %3154 = vmatpush3.bf16.msra.mxu0 %v3344_v8  ;;  %v3389_v2 = vld [vmem:[#allocation7 + $0x20] sm:$0xff]   ;;  %v3391_v4 = vld [vmem:[#allocation4 + $0x10] sm:$0xff]   ;;  %v3392_v5 = vld [vmem:[#allocation7 + $0x18] sm:$0xff]  }
  0x39   :  { %3155 = vmatprep.subr.bf16.mxu0 %v3691_v0  ;;  %3172 = vmatpush3.bf16.msra.mxu1 %v3362_v25  ;;  %v3393_v6 = vld [vmem:[#allocation7 + $0x50] sm:$0xff]   ;;  %v3394_v7 = vld [vmem:[#allocation4 + $0x8] sm:$0xff]   ;;  %v3400_v13 = vld [vmem:[#allocation7] sm:$0xff]  }
  0x3a   :  { %3173 = vmatprep.subr.bf16.mxu1 %v3691_v0  ;;  %v3395_v8 = vld [vmem:[#allocation7 + $0x10] sm:$0xff]   ;;  %v3396_v9 = vld [vmem:[#allocation7 + $0x48] sm:$0xff]   ;;  %v3839_v25 = vld [vmem:[%s3952_s6] ss:$0 sm:$0xff] }
  0x3b   :  { %v3405_v40 = vld [vmem:[#allocation7 + $0x38] sm:$0xff]  }
  0x3c   :  { %3156 = vmatpush3.bf16.msra.mxu0 %v3347_v10  ;;  %v3397_v10 = vld [vmem:[#allocation4] sm:$0xff]  }
  0x3d   :  { %3157 = vmatprep.subr.bf16.mxu0 %v3691_v0  ;;  %3174 = vmatpush3.bf16.msra.mxu1 %v3365_v28 }
  0x3e   :  { %3175 = vmatprep.subr.bf16.mxu1 %v3691_v0 }
  0x40   :  { %3158 = vmatpush3.bf16.msra.mxu0 %v3349_v11  ;;  %v3398_v11 = vld [vmem:[#allocation7 + $0x8] sm:$0xff]  }
  0x41   :  { %3159 = vmatprep.subr.bf16.mxu0 %v3691_v0  ;;  %3176 = vmatpush3.bf16.msra.mxu1 %v3368_v31 }
  0x42   :  { %3177 = vmatprep.subr.bf16.mxu1 %v3691_v0 }
  0x44   :  { %3160 = vmatpush3.bf16.msra.mxu0 %v3350_v12  ;;  %v3399_v12 = vld [vmem:[#allocation7 + $0x40] sm:$0xff]  }
  0x45   :  { %2884 = vmatprep.subr.bf16.mxu0 %v3351_v14  ;;  %3178 = vmatpush3.bf16.msra.mxu1 %v3373_v36  ;;  %v3404_v14 = vld [vmem:[#allocation7 + $0x78] sm:$0xff]  }
  0x46   :  { %3179 = vmatprep.subr.bf16.mxu1 %v3691_v0 }
  0x47   :  { %3162 = vmatmul.mubr.bf16.vlgmr.msra.gmra.mxu0 %v218_v16 }
  0x48   :  { %2885 = vmatpush3.bf16.msra.mxu0 %v3352_v15  ;;  %487 = vmatprep.mubr.bf16.mxu0 %v326_v41  ;;  %v3403_v41 = vld [vmem:[#allocation4 + $0x28] sm:$0xff]  }
  0x49   :  { %2886 = vmatprep.subr.bf16.mxu0 %v3354_v17  ;;  %3180 = vmatpush3.bf16.msra.mxu1 %v3376_v39 }
  0x4a   :  { %3185 = vmatprep.subr.bf16.mxu1 %v3691_v0 }
  0x4c   :  { %2887 = vmatpush3.bf16.msra.mxu0 %v3355_v18 }
  0x4d   :  { %2888 = vmatprep.subr.bf16.mxu0 %v3357_v20 }
  0x50   :  { %2889 = vmatpush3.bf16.msra.mxu0 %v3358_v21 }
  0x51   :  { %2890 = vmatprep.subr.bf16.mxu0 %v3360_v23 }
  0x54   :  { %2891 = vmatpush3.bf16.msra.mxu0 %v3361_v24 }
  0x55   :  { %2892 = vmatprep.subr.bf16.mxu0 %v3363_v26 }
  0x58   :  { %2893 = vmatpush3.bf16.msra.mxu0 %v3364_v27 }
  0x59   :  { %2894 = vmatprep.subr.bf16.mxu0 %v3366_v29 }
  0x5c   :  { %2895 = vmatpush3.bf16.msra.mxu0 %v3367_v30 }
  0x5d   :  { %2896 = vmatprep.subr.bf16.mxu0 %v3371_v34 }
  0x60   :  { %2897 = vmatpush3.bf16.msra.mxu0 %v3372_v35  ;;  %v3401_v35 = vld [vmem:[#allocation4 + $0x38] sm:$0xff]  }
  0x61   :  { %2898 = vmatprep.subr.bf16.mxu0 %v3374_v37 }
  0x64   :  { %2899 = vmatpush3.bf16.msra.mxu0 %v3375_v38  ;;  %v3402_v38 = vld [vmem:[#allocation4 + $0x30] sm:$0xff]  }
  0x65   :  { %2915 = vmatprep.subr.bf16.mxu0 %v3378_v42  ;;  %v3406_v42 = vld [vmem:[#allocation4 + $0x20] sm:$0xff]  }
  0xec   :  { %v3807_v43 = vpop.f32.mrf.mxu1 }
  0xee   :  { %v168_v45 = vpop.f32.mrf.mxu1 }
  0xef   :  { %v169_v46 = vadd.f32 %v3812_v44, %v168_v45  ;;  %v3407_v45 = vld [vmem:[#allocation7 + $0x70] sm:$0xff]  }
  0xf0   :  { %v3825_v15 = vpop.f32.mrf.mxu1 }
  0xf2   :  { %v171_v16 = vpop.f32.mrf.mxu1 }
  0xf3   :  { %v172_v21 = vadd.f32 %v3812_v44, %v171_v16  ;;  %v3427_v16 = vld [vmem:[#allocation4 + $0x28] sm:$0xff]  }
  0xf4   :  { %v3827_v17 = vpop.f32.mrf.mxu1 }
  0xf6   :  { %v3829_v18 = vpop.f32.mrf.mxu1 }
  0xf8   :  { %v3831_v19 = vpop.f32.mrf.mxu1 }
  0xfa   :  { %v3833_v20 = vpop.f32.mrf.mxu1 }
 0x107   :  { %v317_v47 = vpop.f32.mrf.mxu0 }
 0x108   :  { %v323_v48 = vadd.f32 %v317_v47, %v169_v46  ;;  %v3408_v46 = vld [vmem:[#allocation7 + $0x30] sm:$0xff]   ;;  %v3409_v47 = vld [vmem:[#allocation4 + $0x18] sm:$0xff]  }
 0x109   :  { %v3163_v49 = vpop.f32.mrf.mxu0 }
 0x10a   :  { %3545 = vtanh.f32 %v323_v48  ;;  %v3410_v48 = vld [vmem:[#allocation7 + $0x68] sm:$0xff]  }
 0x10b   :  { %v320_v50 = vpop.f32.mrf.mxu0  ;;  %v3411_v49 = vld [vmem:[#allocation7 + $0x28] sm:$0xff]  }
 0x10c   :  { %v3412_v50 = vld [vmem:[#allocation4 + $0x10] sm:$0xff]  }
 0x10d   :  { %v3164_v51 = vpop.f32.mrf.mxu0 }
 0x10e   :  { %v3413_v51 = vld [vmem:[#allocation7 + $0x60] sm:$0xff]  }
 0x117   :  { %v3546_v52 = vpop.eup %3545 }
 0x118   :  { %v325_v55 = vpack.c.bf16 %v3546_v52, %v3546_v52  ;;  %v3414_v52 = vld [vmem:[#allocation7 + $0x20] sm:$0xff]  }
 0x11a   :  { %488 = vmatmul.mubr.bf16.vlgmr.msra.gmra.mxu0 %v325_v55  ;;  %3182 = vmatmul.mubr.bf16.vlgmr.msra.gmra.mxu1 %v325_v55  ;;  %v3417_v55 = vld [vmem:[#allocation7 + $0x18] sm:$0xff]  }
 0x11b   :  { %3186 = vmatpush3.bf16.msra.mxu1 %v3377_v53  ;;  %2916 = vmatpush3.bf16.msra.mxu0 %v3380_v54  ;;  %v3415_v53 = vld [vmem:[#allocation4 + $0x8] sm:$0xff]   ;;  %v3416_v54 = vld [vmem:[#allocation7 + $0x58] sm:$0xff]  }
 0x11c   :  { %3187 = vmatprep.subr.bf16.mxu1 %v3691_v0  ;;  %2917 = vmatprep.subr.bf16.mxu0 %v3381_v56  ;;  %v3418_v56 = vld [vmem:[#allocation4] sm:$0xff]  }
 0x11d   :  { %3201 = vmatprep.mubr.msk.bf16.mxu1 %vm3692_vm0, %v3691_v0 }
 0x11f   :  { %3188 = vmatpush3.bf16.msra.mxu1 %v3379_v57  ;;  %2918 = vmatpush3.bf16.msra.mxu0 %v3383_v58  ;;  %v3419_v57 = vld [vmem:[#allocation7 + $0x50] sm:$0xff]  }
 0x120   :  { %3189 = vmatprep.subr.bf16.mxu1 %v3691_v0  ;;  %2919 = vmatprep.subr.bf16.mxu0 %v3384_v60  ;;  %v3420_v58 = vld [vmem:[#allocation7 + $0x10] sm:$0xff]   ;;  %v3422_v60 = vld [vmem:[#allocation7 + $0x8] sm:$0xff]  }
 0x123   :  { %3190 = vmatpush3.bf16.msra.mxu1 %v3382_v59  ;;  %2920 = vmatpush3.bf16.msra.mxu0 %v3386_v62  ;;  %v3421_v59 = vld [vmem:[#allocation7 + $0x48] sm:$0xff]   ;;  %v3424_v62 = vld [vmem:[#allocation7] sm:$0xff]  }
 0x124   :  { %3191 = vmatprep.subr.bf16.mxu1 %v3691_v0  ;;  %2921 = vmatprep.subr.bf16.mxu0 %v3387_v63  ;;  %v177_v63 = vadd.f32 %v3807_v43, %v3812_v44  ;;  %v3426_v43 = vld [vmem:[#allocation4 + $0x30] sm:$0xff]  }
 0x127   :  { %3192 = vmatpush3.bf16.msra.mxu1 %v3385_v61  ;;  %2922 = vmatpush3.bf16.msra.mxu0 %v3389_v2  ;;  %v3423_v61 = vld [vmem:[#allocation7 + $0x40] sm:$0xff]  }
 0x128   :  { %3193 = vmatprep.subr.bf16.mxu1 %v3691_v0  ;;  %2923 = vmatprep.subr.bf16.mxu0 %v3390_v3 }
 0x12b   :  { %3194 = vmatpush3.bf16.msra.mxu1 %v3388_v1  ;;  %2924 = vmatpush3.bf16.msra.mxu0 %v3392_v5 }
 0x12c   :  { %3195 = vmatprep.subr.bf16.mxu1 %v3691_v0  ;;  %2925 = vmatprep.subr.bf16.mxu0 %v3393_v6 }
 0x12f   :  { %3196 = vmatpush3.bf16.msra.mxu1 %v3391_v4  ;;  %2926 = vmatpush3.bf16.msra.mxu0 %v3395_v8 }
 0x130   :  { %3197 = vmatprep.subr.bf16.mxu1 %v3691_v0  ;;  %2927 = vmatprep.subr.bf16.mxu0 %v3396_v9 }
 0x133   :  { %3198 = vmatpush3.bf16.msra.mxu1 %v3394_v7  ;;  %2928 = vmatpush3.bf16.msra.mxu0 %v3398_v11 }
 0x134   :  { %3199 = vmatprep.subr.bf16.mxu1 %v3691_v0  ;;  %2929 = vmatprep.subr.bf16.mxu0 %v3399_v12 }
 0x137   :  { %3200 = vmatpush3.bf16.msra.mxu1 %v3397_v10  ;;  %2930 = vmatpush3.bf16.msra.mxu0 %v3400_v13  ;;  %v3425_v13 = vld [vmem:[#allocation4 + $0x38] sm:$0xff]  }
 0x138   :  { %3205 = vmatprep.subr.bf16.mxu1 %v3691_v0  ;;  %2946 = vmatprep.subr.bf16.mxu0 %v3404_v14 }
 0x1da   :  { %v2900_v22 = vpop.f32.mrf.mxu0  ;;  %v597_v23 = vpop.f32.mrf.mxu1 }
 0x1db   :  { %v603_v24 = vadd.f32 %v597_v23, %v172_v21  ;;  %v3428_v23 = vld [vmem:[#allocation4 + $0x20] sm:$0xff]  }
 0x1dc   :  { %v2901_v26 = vpop.f32.mrf.mxu0  ;;  %v3183_v27 = vpop.f32.mrf.mxu1 }
 0x1dd   :  { %3547 = vtanh.f32 %v603_v24  ;;  %v2902_v28 = vadd.f32 %v2901_v26, %v2900_v22  ;;  %v3429_v24 = vld [vmem:[#allocation7 + $0x78] sm:$0xff]  }
 0x1de   :  { %v2903_v29 = vpop.f32.mrf.mxu0  ;;  %v600_v30 = vpop.f32.mrf.mxu1  ;;  %v3430_v26 = vld [vmem:[#allocation7 + $0x38] sm:$0xff]  }
 0x1df   :  { %v490_v31 = vadd.f32 %v2902_v28, %v3839_v25  ;;  %v3431_v27 = vld [vmem:[#allocation4 + $0x18] sm:$0xff]   ;;  %v3432_v28 = vld [vmem:[#allocation7 + $0x70] sm:$0xff]  }
 0x1e0   :  { %v2904_v32 = vpop.f32.mrf.mxu0  ;;  %v3184_v33 = vpop.f32.mrf.mxu1  ;;  %v3433_v29 = vld [vmem:[#allocation7 + $0x30] sm:$0xff]  }
 0x1e1   :  { %3549 = vtanh.f32 %v490_v31  ;;  %v3434_v30 = vld [vmem:[#allocation4 + $0x10] sm:$0xff]   ;;  %v3435_v31 = vld [vmem:[#allocation7 + $0x68] sm:$0xff]  }
 0x1e2   :  { %v3436_v32 = vld [vmem:[#allocation7 + $0x28] sm:$0xff]  }
 0x1e3   :  { %v3437_v33 = vld [vmem:[#allocation4 + $0x8] sm:$0xff]  }
 0x1ea   :  { %v3548_v34 = vpop.eup %3547 }
 0x1eb   :  { %v605_v36 = vpack.c.bf16 %v3548_v34, %v3548_v34  ;;  %v3438_v34 = vld [vmem:[#allocation7 + $0x60] sm:$0xff]  }
 0x1ed   :  { %3202 = vmatmul.mubr.bf16.vlgmr.msra.gmra.mxu1 %v605_v36 }
 0x1ee   :  { %v3842_v37 = vpop.eup %3549  ;;  %3206 = vmatpush3.bf16.msra.mxu1 %v3401_v35  ;;  %3221 = vmatprep.mubr.msk.bf16.mxu1 %vm3692_vm0, %v3691_v0  ;;  %v3439_v35 = vld [vmem:[#allocation7 + $0x20] sm:$0xff]  }
 0x1ef   :  { %v606_v39 = vpack.c.bf16 %v3842_v37, %v3842_v37  ;;  %3207 = vmatprep.subr.bf16.mxu1 %v3691_v0 }
 0x1f1   :  { %767 = vmatprep.mubr.bf16.mxu0 %v606_v39  ;;  %v3442_v39 = vld [vmem:[#allocation7 + $0x18] sm:$0xff]  }
 0x1f2   :  { %768 = vmatmul.mubr.bf16.vlgmr.msra.gmra.mxu0 %v605_v36  ;;  %3208 = vmatpush3.bf16.msra.mxu1 %v3402_v38  ;;  %v3440_v36 = vld [vmem:[#allocation4] sm:$0xff]   ;;  %v3441_v38 = vld [vmem:[#allocation7 + $0x58] sm:$0xff]  }
 0x1f3   :  { %3209 = vmatprep.subr.bf16.mxu1 %v3691_v0  ;;  %2947 = vmatpush3.bf16.msra.mxu0 %v3405_v40  ;;  %v3443_v40 = vld [vmem:[#allocation7 + $0x50] sm:$0xff]  }
 0x1f4   :  { %2948 = vmatprep.subr.bf16.mxu0 %v3407_v45  ;;  %v3446_v45 = vld [vmem:[#allocation7 + $0x8] sm:$0xff]  }
 0x1f6   :  { %3210 = vmatpush3.bf16.msra.mxu1 %v3403_v41  ;;  %v3444_v41 = vld [vmem:[#allocation7 + $0x10] sm:$0xff]  }
 0x1f7   :  { %3211 = vmatprep.subr.bf16.mxu1 %v3691_v0  ;;  %2949 = vmatpush3.bf16.msra.mxu0 %v3408_v46  ;;  %v3447_v46 = vld [vmem:[#allocation7 + $0x40] sm:$0xff]  }
 0x1f8   :  { %2950 = vmatprep.subr.bf16.mxu0 %v3410_v48  ;;  %v180_v48 = vadd.f32 %v3825_v15, %v3812_v44  ;;  %v3450_v15 = vld [vmem:[#allocation4 + $0x30] sm:$0xff]  }
 0x1fa   :  { %3212 = vmatpush3.bf16.msra.mxu1 %v3406_v42  ;;  %v3445_v42 = vld [vmem:[#allocation7 + $0x48] sm:$0xff]  }
 0x1fb   :  { %3213 = vmatprep.subr.bf16.mxu1 %v3691_v0  ;;  %2951 = vmatpush3.bf16.msra.mxu0 %v3411_v49 }
 0x1fc   :  { %2952 = vmatprep.subr.bf16.mxu0 %v3413_v51 }
 0x1fe   :  { %3214 = vmatpush3.bf16.msra.mxu1 %v3409_v47  ;;  %v3448_v47 = vld [vmem:[#allocation7] sm:$0xff]  }
 0x1ff   :  { %3215 = vmatprep.subr.bf16.mxu1 %v3691_v0  ;;  %2953 = vmatpush3.bf16.msra.mxu0 %v3414_v52 }
 0x200   :  { %2954 = vmatprep.subr.bf16.mxu0 %v3416_v54 }
 0x202   :  { %3216 = vmatpush3.bf16.msra.mxu1 %v3412_v50 }
 0x203   :  { %3217 = vmatprep.subr.bf16.mxu1 %v3691_v0  ;;  %2955 = vmatpush3.bf16.msra.mxu0 %v3417_v55 }
 0x204   :  { %2956 = vmatprep.subr.bf16.mxu0 %v3419_v57 }
 0x206   :  { %3218 = vmatpush3.bf16.msra.mxu1 %v3415_v53 }
 0x207   :  { %3219 = vmatprep.subr.bf16.mxu1 %v3691_v0  ;;  %2957 = vmatpush3.bf16.msra.mxu0 %v3420_v58 }
 0x208   :  { %2958 = vmatprep.subr.bf16.mxu0 %v3421_v59 }
 0x20a   :  { %3220 = vmatpush3.bf16.msra.mxu1 %v3418_v56 }
 0x20b   :  { %3225 = vmatprep.subr.bf16.mxu1 %v3691_v0  ;;  %2959 = vmatpush3.bf16.msra.mxu0 %v3422_v60 }
 0x20c   :  { %2960 = vmatprep.subr.bf16.mxu0 %v3423_v61  ;;  %v3449_v61 = vld [vmem:[#allocation4 + $0x38] sm:$0xff]  }
 0x20f   :  { %2961 = vmatpush3.bf16.msra.mxu0 %v3424_v62 }
 0x210   :  { %2977 = vmatprep.subr.bf16.mxu0 %v3429_v24  ;;  %v3468_v24 = vld [vmem:[#allocation7 + $0x10] sm:$0xff]  }
 0x2ad   :  { %v878_v1 = vpop.f32.mrf.mxu1 }
 0x2ae   :  { %v884_v2 = vadd.f32 %v878_v1, %v177_v63  ;;  %v3451_v63 = vld [vmem:[#allocation4 + $0x28] sm:$0xff]  }
 0x2af   :  { %v3203_v3 = vpop.f32.mrf.mxu1 }
 0x2b0   :  { %3551 = vtanh.f32 %v884_v2  ;;  %v3452_v3 = vld [vmem:[#allocation4 + $0x20] sm:$0xff]  }
 0x2b1   :  { %v881_v4 = vpop.f32.mrf.mxu1 }
 0x2b2   :  { %v2931_v5 = vpop.f32.mrf.mxu0  ;;  %v3453_v4 = vld [vmem:[#allocation4 + $0x18] sm:$0xff]  }
 0x2b3   :  { %v3204_v6 = vpop.f32.mrf.mxu1 }
 0x2b4   :  { %v2932_v7 = vpop.f32.mrf.mxu0  ;;  %v3455_v6 = vld [vmem:[#allocation7 + $0x38] sm:$0xff]  }
 0x2b5   :  { %v2933_v8 = vadd.f32 %v2932_v7, %v2931_v5  ;;  %v3454_v5 = vld [vmem:[#allocation7 + $0x78] sm:$0xff]   ;;  %v3456_v7 = vld [vmem:[#allocation4 + $0x10] sm:$0xff]  }
 0x2b6   :  { %v2934_v9 = vpop.f32.mrf.mxu0 }
 0x2b7   :  { %v770_v10 = vadd.f32 %v2933_v8, %v3839_v25  ;;  %v3457_v8 = vld [vmem:[#allocation7 + $0x70] sm:$0xff]  }
 0x2b8   :  { %v2935_v11 = vpop.f32.mrf.mxu0  ;;  %v3458_v9 = vld [vmem:[#allocation7 + $0x30] sm:$0xff]  }
 0x2b9   :  { %3553 = vtanh.f32 %v770_v10  ;;  %v3459_v10 = vld [vmem:[#allocation4 + $0x8] sm:$0xff]  }
 0x2ba   :  { %v3460_v11 = vld [vmem:[#allocation7 + $0x68] sm:$0xff]  }
 0x2bd   :  { %v3552_v12 = vpop.eup %3551 }
 0x2be   :  { %v886_v14 = vpack.c.bf16 %v3552_v12, %v3552_v12  ;;  %v3461_v12 = vld [vmem:[#allocation7 + $0x28] sm:$0xff]  }
 0x2c0   :  { %3222 = vmatmul.mubr.bf16.vlgmr.msra.gmra.mxu1 %v886_v14 }
 0x2c1   :  { %3226 = vmatpush3.bf16.msra.mxu1 %v3425_v13  ;;  %3241 = vmatprep.mubr.msk.bf16.mxu1 %vm3692_vm0, %v3691_v0  ;;  %v3462_v13 = vld [vmem:[#allocation4] sm:$0xff]  }
 0x2c2   :  { %3227 = vmatprep.subr.bf16.mxu1 %v3691_v0 }
 0x2c5   :  { %3228 = vmatpush3.bf16.msra.mxu1 %v3426_v43  ;;  %v3464_v43 = vld [vmem:[#allocation7 + $0x20] sm:$0xff]  }
 0x2c6   :  { %v3862_v21 = vpop.eup %3553  ;;  %3229 = vmatprep.subr.bf16.mxu1 %v3691_v0 }
 0x2c7   :  { %v887_v22 = vpack.c.bf16 %v3862_v21, %v3862_v21 }
 0x2c9   :  { %1048 = vmatprep.mubr.bf16.mxu0 %v887_v22  ;;  %3230 = vmatpush3.bf16.msra.mxu1 %v3427_v16  ;;  %v3465_v16 = vld [vmem:[#allocation7 + $0x58] sm:$0xff]  }
 0x2ca   :  { %1049 = vmatmul.mubr.bf16.vlgmr.msra.gmra.mxu0 %v886_v14  ;;  %3231 = vmatprep.subr.bf16.mxu1 %v3691_v0  ;;  %v3463_v14 = vld [vmem:[#allocation7 + $0x60] sm:$0xff]   ;;  %v3466_v22 = vld [vmem:[#allocation7 + $0x18] sm:$0xff]  }
 0x2cb   :  { %2978 = vmatpush3.bf16.msra.mxu0 %v3430_v26  ;;  %v3469_v26 = vld [vmem:[#allocation7 + $0x48] sm:$0xff]  }
 0x2cc   :  { %2979 = vmatprep.subr.bf16.mxu0 %v3432_v28  ;;  %v3471_v28 = vld [vmem:[#allocation7 + $0x40] sm:$0xff]  }
 0x2cd   :  { %3232 = vmatpush3.bf16.msra.mxu1 %v3428_v23  ;;  %v3467_v23 = vld [vmem:[#allocation7 + $0x50] sm:$0xff]  }
 0x2ce   :  { %3233 = vmatprep.subr.bf16.mxu1 %v3691_v0 }
 0x2cf   :  { %2980 = vmatpush3.bf16.msra.mxu0 %v3433_v29  ;;  %v3472_v29 = vld [vmem:[#allocation7] sm:$0xff]  }
 0x2d0   :  { %2981 = vmatprep.subr.bf16.mxu0 %v3435_v31 }
 0x2d1   :  { %3234 = vmatpush3.bf16.msra.mxu1 %v3431_v27  ;;  %v3470_v27 = vld [vmem:[#allocation7 + $0x8] sm:$0xff]  }
 0x2d2   :  { %3235 = vmatprep.subr.bf16.mxu1 %v3691_v0 }
 0x2d3   :  { %2982 = vmatpush3.bf16.msra.mxu0 %v3436_v32 }
 0x2d4   :  { %2983 = vmatprep.subr.bf16.mxu0 %v3438_v34 }
 0x2d5   :  { %3236 = vmatpush3.bf16.msra.mxu1 %v3434_v30  ;;  %v185_v30 = vadd.f32 %v3812_v44, %v3829_v18 }
 0x2d6   :  { %3237 = vmatprep.subr.bf16.mxu1 %v3691_v0 }
 0x2d7   :  { %2984 = vmatpush3.bf16.msra.mxu0 %v3439_v35 }
 0x2d8   :  { %2985 = vmatprep.subr.bf16.mxu0 %v3441_v38 }
 0x2d9   :  { %3238 = vmatpush3.bf16.msra.mxu1 %v3437_v33 }
 0x2da   :  { %3239 = vmatprep.subr.bf16.mxu1 %v3691_v0 }
 0x2db   :  { %2986 = vmatpush3.bf16.msra.mxu0 %v3442_v39  ;;  %v3473_v39 = vld [vmem:[#allocation4 + $0x38] sm:$0xff]  }
 0x2dc   :  { %2987 = vmatprep.subr.bf16.mxu0 %v3443_v40 }
 0x2dd   :  { %3240 = vmatpush3.bf16.msra.mxu1 %v3440_v36 }
 0x2de   :  { %3245 = vmatprep.subr.bf16.mxu1 %v3691_v0 }
 0x2df   :  { %2988 = vmatpush3.bf16.msra.mxu0 %v3444_v41 }
 0x2e0   :  { %2989 = vmatprep.subr.bf16.mxu0 %v3445_v42 }
 0x2e3   :  { %2990 = vmatpush3.bf16.msra.mxu0 %v3446_v45 }
 0x2e4   :  { %2991 = vmatprep.subr.bf16.mxu0 %v3447_v46 }
 0x2e7   :  { %2992 = vmatpush3.bf16.msra.mxu0 %v3448_v47  ;;  %v3474_v47 = vld [vmem:[#allocation4 + $0x30] sm:$0xff]  }
 0x2e8   :  { %3008 = vmatprep.subr.bf16.mxu0 %v3454_v5  ;;  %v3493_v5 = vld [vmem:[#allocation7 + $0x48] sm:$0xff]  }
 0x380   :  { %v1159_v49 = vpop.f32.mrf.mxu1 }
 0x381   :  { %v1165_v50 = vadd.f32 %v1159_v49, %v180_v48  ;;  %v3475_v48 = vld [vmem:[#allocation4 + $0x28] sm:$0xff]  }
 0x382   :  { %v3223_v51 = vpop.f32.mrf.mxu1 }
 0x383   :  { %3555 = vtanh.f32 %v1165_v50  ;;  %v3476_v51 = vld [vmem:[#allocation4 + $0x20] sm:$0xff]  }
 0x384   :  { %v1162_v52 = vpop.f32.mrf.mxu1 }
 0x385   :  { %v3477_v52 = vld [vmem:[#allocation4 + $0x18] sm:$0xff]  }
 0x386   :  { %v3224_v53 = vpop.f32.mrf.mxu1 }
 0x387   :  { %v3478_v53 = vld [vmem:[#allocation4 + $0x10] sm:$0xff]  }
 0x38a   :  { %v2962_v54 = vpop.f32.mrf.mxu0 }
 0x38c   :  { %v2963_v55 = vpop.f32.mrf.mxu0 }
 0x38d   :  { %v2964_v56 = vadd.f32 %v2963_v55, %v2962_v54  ;;  %v3479_v54 = vld [vmem:[#allocation7 + $0x78] sm:$0xff]   ;;  %v3480_v55 = vld [vmem:[#allocation4 + $0x8] sm:$0xff]  }
 0x38e   :  { %v2965_v57 = vpop.f32.mrf.mxu0 }
 0x38f   :  { %v1051_v58 = vadd.f32 %v2964_v56, %v3839_v25  ;;  %v3481_v56 = vld [vmem:[#allocation7 + $0x38] sm:$0xff]   ;;  %v3482_v57 = vld [vmem:[#allocation7 + $0x70] sm:$0xff]  }
 0x390   :  { %v3556_v59 = vpop.eup %3555  ;;  %v2966_v60 = vpop.f32.mrf.mxu0 }
 0x391   :  { %v1167_v62 = vpack.c.bf16 %v3556_v59, %v3556_v59  ;;  %3557 = vtanh.f32 %v1051_v58  ;;  %v3483_v58 = vld [vmem:[#allocation4] sm:$0xff]   ;;  %v3484_v59 = vld [vmem:[#allocation7 + $0x30] sm:$0xff]   ;;  %v3485_v60 = vld [vmem:[#allocation7 + $0x68] sm:$0xff]  }
 0x393   :  { %3242 = vmatmul.mubr.bf16.vlgmr.msra.gmra.mxu1 %v1167_v62 }
 0x394   :  { %3246 = vmatpush3.bf16.msra.mxu1 %v3449_v61  ;;  %3261 = vmatprep.mubr.msk.bf16.mxu1 %vm3692_vm0, %v3691_v0  ;;  %v3486_v61 = vld [vmem:[#allocation7 + $0x28] sm:$0xff]  }
 0x395   :  { %3247 = vmatprep.subr.bf16.mxu1 %v3691_v0 }
 0x398   :  { %3248 = vmatpush3.bf16.msra.mxu1 %v3450_v15  ;;  %v3488_v15 = vld [vmem:[#allocation7 + $0x20] sm:$0xff]  }
 0x399   :  { %3249 = vmatprep.subr.bf16.mxu1 %v3691_v0 }
 0x39c   :  { %3250 = vmatpush3.bf16.msra.mxu1 %v3451_v63  ;;  %v3489_v63 = vld [vmem:[#allocation7 + $0x58] sm:$0xff]  }
 0x39d   :  { %3251 = vmatprep.subr.bf16.mxu1 %v3691_v0 }
 0x39e   :  { %v3881_v1 = vpop.eup %3557 }
 0x39f   :  { %v1168_v2 = vpack.c.bf16 %v3881_v1, %v3881_v1 }
 0x3a0   :  { %3252 = vmatpush3.bf16.msra.mxu1 %v3452_v3  ;;  %v3491_v3 = vld [vmem:[#allocation7 + $0x50] sm:$0xff]  }
 0x3a1   :  { %1329 = vmatprep.mubr.bf16.mxu0 %v1168_v2  ;;  %3253 = vmatprep.subr.bf16.mxu1 %v3691_v0  ;;  %v3490_v2 = vld [vmem:[#allocation7 + $0x18] sm:$0xff]  }
 0x3a2   :  { %1330 = vmatmul.mubr.bf16.vlgmr.msra.gmra.mxu0 %v1167_v62  ;;  %v3487_v62 = vld [vmem:[#allocation7 + $0x60] sm:$0xff]  }
 0x3a3   :  { %3009 = vmatpush3.bf16.msra.mxu0 %v3455_v6  ;;  %v3494_v6 = vld [vmem:[#allocation7 + $0x8] sm:$0xff]  }
 0x3a4   :  { %3254 = vmatpush3.bf16.msra.mxu1 %v3453_v4  ;;  %3010 = vmatprep.subr.bf16.mxu0 %v3457_v8  ;;  %v3492_v4 = vld [vmem:[#allocation7 + $0x10] sm:$0xff]   ;;  %v3496_v8 = vld [vmem:[#allocation7] sm:$0xff]  }
 0x3a5   :  { %3255 = vmatprep.subr.bf16.mxu1 %v3691_v0 }
 0x3a7   :  { %3011 = vmatpush3.bf16.msra.mxu0 %v3458_v9  ;;  %v188_v9 = vadd.f32 %v3812_v44, %v3833_v20 }
 0x3a8   :  { %3256 = vmatpush3.bf16.msra.mxu1 %v3456_v7  ;;  %3012 = vmatprep.subr.bf16.mxu0 %v3460_v11  ;;  %v3495_v7 = vld [vmem:[#allocation7 + $0x40] sm:$0xff]  }
 0x3a9   :  { %3257 = vmatprep.subr.bf16.mxu1 %v3691_v0 }
 0x3ab   :  { %3013 = vmatpush3.bf16.msra.mxu0 %v3461_v12 }
 0x3ac   :  { %3258 = vmatpush3.bf16.msra.mxu1 %v3459_v10  ;;  %3014 = vmatprep.subr.bf16.mxu0 %v3463_v14 }
 0x3ad   :  { %3259 = vmatprep.subr.bf16.mxu1 %v3691_v0 }
 0x3af   :  { %3015 = vmatpush3.bf16.msra.mxu0 %v3464_v43 }
 0x3b0   :  { %3260 = vmatpush3.bf16.msra.mxu1 %v3462_v13  ;;  %3016 = vmatprep.subr.bf16.mxu0 %v3465_v16  ;;  %v3497_v16 = vld [vmem:[#allocation4 + $0x38] sm:$0xff]  }
 0x3b1   :  { %3265 = vmatprep.subr.bf16.mxu1 %v3691_v0 }
 0x3b3   :  { %3017 = vmatpush3.bf16.msra.mxu0 %v3466_v22 }
 0x3b4   :  { %3018 = vmatprep.subr.bf16.mxu0 %v3467_v23 }
 0x3b7   :  { %3019 = vmatpush3.bf16.msra.mxu0 %v3468_v24  ;;  %v3498_v24 = vld [vmem:[#allocation4 + $0x30] sm:$0xff]  }
 0x3b8   :  { %3020 = vmatprep.subr.bf16.mxu0 %v3469_v26 }
 0x3bb   :  { %3021 = vmatpush3.bf16.msra.mxu0 %v3470_v27 }
 0x3bc   :  { %3022 = vmatprep.subr.bf16.mxu0 %v3471_v28  ;;  %v3499_v28 = vld [vmem:[#allocation4 + $0x28] sm:$0xff]  }
 0x3bf   :  { %3023 = vmatpush3.bf16.msra.mxu0 %v3472_v29 }
 0x3c0   :  { %3039 = vmatprep.subr.bf16.mxu0 %v3479_v54  ;;  %v3524_v54 = vld [vmem:[#allocation7 + $0x8] sm:$0xff]  }
 0x453   :  { %v1440_v31 = vpop.f32.mrf.mxu1 }
 0x454   :  { %v1446_v32 = vadd.f32 %v1440_v31, %v185_v30  ;;  %v3500_v31 = vld [vmem:[#allocation4 + $0x20] sm:$0xff]  }
 0x455   :  { %v3243_v33 = vpop.f32.mrf.mxu1 }
 0x456   :  { %3559 = vtanh.f32 %v1446_v32 }
 0x457   :  { %v1443_v34 = vpop.f32.mrf.mxu1 }
 0x458   :  { %v3501_v34 = vld [vmem:[#allocation4 + $0x18] sm:$0xff]  }
 0x459   :  { %v3244_v35 = vpop.f32.mrf.mxu1 }
 0x45a   :  { %v3502_v35 = vld [vmem:[#allocation4 + $0x10] sm:$0xff]  }
 0x462   :  { %v2993_v36 = vpop.f32.mrf.mxu0 }
 0x463   :  { %v3560_v38 = vpop.eup %3559 }
 0x464   :  { %v1448_v40 = vpack.c.bf16 %v3560_v38, %v3560_v38  ;;  %v2994_v41 = vpop.f32.mrf.mxu0  ;;  %v3504_v38 = vld [vmem:[#allocation4] sm:$0xff]  }
 0x465   :  { %v2995_v42 = vadd.f32 %v2994_v41, %v2993_v36  ;;  %v3503_v36 = vld [vmem:[#allocation4 + $0x8] sm:$0xff]   ;;  %v3507_v41 = vld [vmem:[#allocation9 + $0x38] sm:$0xff]  }
 0x466   :  { %v2996_v45 = vpop.f32.mrf.mxu0  ;;  %3262 = vmatmul.mubr.bf16.vlgmr.msra.gmra.mxu1 %v1448_v40 }
 0x467   :  { %v1332_v46 = vadd.f32 %v2995_v42, %v3839_v25  ;;  %3266 = vmatpush3.bf16.msra.mxu1 %v3473_v39  ;;  %3281 = vmatprep.mubr.msk.bf16.mxu1 %vm3692_vm0, %v3691_v0  ;;  %v3505_v39 = vld [vmem:[#allocation7 + $0x78] sm:$0xff]   ;;  %v3508_v42 = vld [vmem:[#allocation7 + $0x70] sm:$0xff]  }
 0x468   :  { %v2997_v18 = vpop.f32.mrf.mxu0  ;;  %3267 = vmatprep.subr.bf16.mxu1 %v3691_v0  ;;  %v3509_v45 = vld [vmem:[#allocation7 + $0x30] sm:$0xff]  }
 0x469   :  { %3561 = vtanh.f32 %v1332_v46  ;;  %v3511_v46 = vld [vmem:[#allocation7 + $0x68] sm:$0xff]   ;;  %v3514_v18 = vld [vmem:[#allocation7 + $0x60] sm:$0xff]  }
 0x46b   :  { %3268 = vmatpush3.bf16.msra.mxu1 %v3474_v47  ;;  %v3512_v47 = vld [vmem:[#allocation7 + $0x28] sm:$0xff]  }
 0x46c   :  { %3269 = vmatprep.subr.bf16.mxu1 %v3691_v0 }
 0x46f   :  { %3270 = vmatpush3.bf16.msra.mxu1 %v3475_v48  ;;  %v3515_v48 = vld [vmem:[#allocation7 + $0x20] sm:$0xff]  }
 0x470   :  { %3271 = vmatprep.subr.bf16.mxu1 %v3691_v0 }
 0x473   :  { %3272 = vmatpush3.bf16.msra.mxu1 %v3476_v51  ;;  %v3520_v51 = vld [vmem:[#allocation7 + $0x50] sm:$0xff]  }
 0x474   :  { %3273 = vmatprep.subr.bf16.mxu1 %v3691_v0 }
 0x476   :  { %v3898_v49 = vpop.eup %3561 }
 0x477   :  { %v1449_v50 = vpack.c.bf16 %v3898_v49, %v3898_v49  ;;  %3274 = vmatpush3.bf16.msra.mxu1 %v3477_v52  ;;  %v3521_v52 = vld [vmem:[#allocation7 + $0x10] sm:$0xff]  }
 0x478   :  { %3275 = vmatprep.subr.bf16.mxu1 %v3691_v0 }
 0x479   :  { %1610 = vmatprep.mubr.bf16.mxu0 %v1449_v50  ;;  %v3518_v50 = vld [vmem:[#allocation7 + $0x18] sm:$0xff]  }
 0x47a   :  { %1611 = vmatmul.mubr.bf16.vlgmr.msra.gmra.mxu0 %v1448_v40  ;;  %v3506_v40 = vld [vmem:[#allocation7 + $0x38] sm:$0xff]  }
 0x47b   :  { %3276 = vmatpush3.bf16.msra.mxu1 %v3478_v53  ;;  %3040 = vmatpush3.bf16.msra.mxu0 %v3481_v56  ;;  %v3523_v53 = vld [vmem:[#allocation7 + $0x48] sm:$0xff]   ;;  %v3527_v56 = vld [vmem:[#allocation7] sm:$0xff]  }
 0x47c   :  { %3277 = vmatprep.subr.bf16.mxu1 %v3691_v0  ;;  %3041 = vmatprep.subr.bf16.mxu0 %v3482_v57  ;;  %v193_v57 = vadd.f32 %v3827_v17, %v3812_v44  ;;  %v3516_v44 = vld [vmem:[#allocation9 + $0x20] sm:$0xff]  }
 0x47f   :  { %3278 = vmatpush3.bf16.msra.mxu1 %v3480_v55  ;;  %3042 = vmatpush3.bf16.msra.mxu0 %v3484_v59  ;;  %v3526_v55 = vld [vmem:[#allocation7 + $0x40] sm:$0xff]  }
 0x480   :  { %3279 = vmatprep.subr.bf16.mxu1 %v3691_v0  ;;  %3043 = vmatprep.subr.bf16.mxu0 %v3485_v60 }
 0x483   :  { %3280 = vmatpush3.bf16.msra.mxu1 %v3483_v58  ;;  %3044 = vmatpush3.bf16.msra.mxu0 %v3486_v61 }
 0x484   :  { %3285 = vmatprep.subr.bf16.mxu1 %v3691_v0  ;;  %3045 = vmatprep.subr.bf16.mxu0 %v3487_v62 }
 0x487   :  { %3046 = vmatpush3.bf16.msra.mxu0 %v3488_v15 }
 0x488   :  { %3047 = vmatprep.subr.bf16.mxu0 %v3489_v63 }
 0x48b   :  { %3048 = vmatpush3.bf16.msra.mxu0 %v3490_v2  ;;  %v3510_v2 = vld [vmem:[#allocation9 + $0x30] sm:$0xff]  }
 0x48c   :  { %3049 = vmatprep.subr.bf16.mxu0 %v3491_v3  ;;  %v2475_v3 = vpack.c.bf16 %v3862_v21, %v3842_v37  ;;  %v3522_v37 = vld [vmem:[#allocation9 + $0x10] sm:$0xff]   ;;  %v3525_v21 = vld [vmem:[#allocation9 + $0x8] sm:$0xff]  }
 0x48f   :  { %3050 = vmatpush3.bf16.msra.mxu0 %v3492_v4  ;;  %v3513_v4 = vld [vmem:[#allocation9 + $0x28] sm:$0xff]  }
 0x490   :  { %3051 = vmatprep.subr.bf16.mxu0 %v3493_v5 }
 0x493   :  { %3052 = vmatpush3.bf16.msra.mxu0 %v3494_v6 }
 0x494   :  { %3053 = vmatprep.subr.bf16.mxu0 %v3495_v7 }
 0x497   :  { %3054 = vmatpush3.bf16.msra.mxu0 %v3496_v8  ;;  %v3519_v8 = vld [vmem:[#allocation9 + $0x18] sm:$0xff]  }
 0x498   :  { %3070 = vmatprep.subr.bf16.mxu0 %v3505_v39 }
 0x526   :  { %v1721_v10 = vpop.f32.mrf.mxu1 }
 0x527   :  { %v1727_v11 = vadd.f32 %v1721_v10, %v188_v9 }
 0x528   :  { %v3263_v12 = vpop.f32.mrf.mxu1 }
 0x529   :  { %3563 = vtanh.f32 %v1727_v11  ;;  %v3528_v11 = vld [vmem:[#allocation9] sm:$0xff]  }
 0x52a   :  { %v1724_v13 = vpop.f32.mrf.mxu1 }
 0x52c   :  { %v3264_v14 = vpop.f32.mrf.mxu1 }
 0x52d   :  { %v2476_v14 = vpack.c.bf16 %v3898_v49, %v3881_v1  ;;  %v3537_v1 = vld [vmem:[#allocation7 + $0x58] sm:$0xff]  }
 0x52e   :  { %v3538_v49 = vld [vmem:[#allocation7 + $0x18] sm:$0xff]  }
 0x536   :  { %v3564_v43 = vpop.eup %3563 }
 0x537   :  { %v1729_v22 = vpack.c.bf16 %v3564_v43, %v3564_v43 }
 0x539   :  { %3282 = vmatmul.mubr.bf16.vlgmr.msra.gmra.mxu1 %v1729_v22 }
 0x53a   :  { %v3024_v23 = vpop.f32.mrf.mxu0  ;;  %3286 = vmatpush3.bf16.msra.mxu1 %v3497_v16  ;;  %3301 = vmatprep.mubr.msk.bf16.mxu1 %vm3692_vm0, %v3691_v0  ;;  %v3529_v16 = vld [vmem:[#allocation7 + $0x78] sm:$0xff]  }
 0x53b   :  { %3287 = vmatprep.subr.bf16.mxu1 %v3691_v0 }
 0x53c   :  { %v3025_v26 = vpop.f32.mrf.mxu0 }
 0x53d   :  { %v3026_v20 = vadd.f32 %v3025_v26, %v3024_v23  ;;  %v3531_v23 = vld [vmem:[#allocation7 + $0x70] sm:$0xff]   ;;  %v3533_v26 = vld [vmem:[#allocation7 + $0x68] sm:$0xff]  }
 0x53e   :  { %v3027_v27 = vpop.f32.mrf.mxu0  ;;  %3288 = vmatpush3.bf16.msra.mxu1 %v3498_v24  ;;  %v3532_v24 = vld [vmem:[#allocation7 + $0x30] sm:$0xff]  }
 0x53f   :  { %v1613_v29 = vadd.f32 %v3026_v20, %v3839_v25  ;;  %3289 = vmatprep.subr.bf16.mxu1 %v3691_v0  ;;  %v3534_v20 = vld [vmem:[#allocation7 + $0x28] sm:$0xff]   ;;  %v3535_v27 = vld [vmem:[#allocation7 + $0x60] sm:$0xff]  }
 0x540   :  { %v3028_v30 = vpop.f32.mrf.mxu0 }
 0x541   :  { %3565 = vtanh.f32 %v1613_v29  ;;  %v3539_v29 = vld [vmem:[#allocation7 + $0x50] sm:$0xff]  }
 0x542   :  { %3290 = vmatpush3.bf16.msra.mxu1 %v3499_v28  ;;  %v3536_v28 = vld [vmem:[#allocation7 + $0x20] sm:$0xff]   ;;  %v3540_v30 = vld [vmem:[#allocation7 + $0x10] sm:$0xff]  }
 0x543   :  { %3291 = vmatprep.subr.bf16.mxu1 %v3691_v0 }
 0x546   :  { %3292 = vmatpush3.bf16.msra.mxu1 %v3500_v31  ;;  %v3541_v31 = vld [vmem:[#allocation7 + $0x48] sm:$0xff]  }
 0x547   :  { %3293 = vmatprep.subr.bf16.mxu1 %v3691_v0 }
 0x54a   :  { %3294 = vmatpush3.bf16.msra.mxu1 %v3501_v34  ;;  %v3544_v34 = vld [vmem:[#allocation7] sm:$0xff]  }
 0x54b   :  { %3295 = vmatprep.subr.bf16.mxu1 %v3691_v0 }
 0x54e   :  { %v3916_v32 = vpop.eup %3565  ;;  %3296 = vmatpush3.bf16.msra.mxu1 %v3502_v35  ;;  %v3577_v35 = vld [vmem:[%s3948_s2] ss:$0 sm:$0xff]  ;;  %s3693_s2 = smov [#allocation11]  }
 0x54f   :  { %v1730_v33 = vpack.c.bf16 %v3916_v32, %v3916_v32  ;;  %3297 = vmatprep.subr.bf16.mxu1 %v3691_v0 }
 0x551   :  { %1891 = vmatprep.mubr.bf16.mxu0 %v1730_v33  ;;  %v3543_v33 = vld [vmem:[#allocation7 + $0x40] sm:$0xff]  }
 0x552   :  { %1892 = vmatmul.mubr.bf16.vlgmr.msra.gmra.mxu0 %v1729_v22  ;;  %3298 = vmatpush3.bf16.msra.mxu1 %v3503_v36  ;;  %v3530_v22 = vld [vmem:[#allocation7 + $0x38] sm:$0xff]   ;;  %v196_v36 = vadd.f32 %v3577_v35, %v3831_v19 }
 0x553   :  { %3299 = vmatprep.subr.bf16.mxu1 %v3691_v0  ;;  %3071 = vmatpush3.bf16.msra.mxu0 %v3506_v40  ;;  %v3517_v0 = vld [vmem:[#allocation7 + $0x58] sm:$0xff]  }
 0x554   :  { %3072 = vmatprep.subr.bf16.mxu0 %v3508_v42 }
 0x556   :  { %3300 = vmatpush3.bf16.msra.mxu1 %v3504_v38 }
 0x557   :  { %3305 = vmatprep.subr.bf16.mxu1 %v3507_v41  ;;  %3073 = vmatpush3.bf16.msra.mxu0 %v3509_v45 }
 0x558   :  { %3074 = vmatprep.subr.bf16.mxu0 %v3511_v46 }
 0x55b   :  { %3075 = vmatpush3.bf16.msra.mxu0 %v3512_v47  ;;  %v2861_v47 = vld [vmem:[%s3954_s8] ss:$0 sm:$0xff]  ;;  %s2640_s8 = sshll.u32 %s3693_s2, 4  ;;  %s2641_s8 = int_to_ptr.vmem [resolvable:$true] %s2640_s8 }
 0x55c   :  { %3076 = vmatprep.subr.bf16.mxu0 %v3514_v18  ;;  %s3638_s25 = scalar_lea.vmem %s2641_s8, 256  ;;  %p3643_p2 = scmp.lt.s32.totalorder %s2641_s8, %s2641_s8 }
 0x55d   :  { %p3639_p1 = scmp.ne.s32.totalorder %s2641_s8, %s3638_s25  ;;  %p3644_p3 = scmp.lt.s32.totalorder %s3638_s25, %s3638_s25 }
 0x55f   :  { %3077 = vmatpush3.bf16.msra.mxu0 %v3515_v48  ;;  %p3645_p4 = por %p3644_p3, %p3643_p2 }
 0x560   :  { %3078 = vmatprep.subr.bf16.mxu0 %v3517_v0 }
 0x561   :  { %p3646_p5 = pnand %p3645_p4, %p3639_p1 }
 0x563   :  { %3079 = vmatpush3.bf16.msra.mxu0 %v3518_v50 }
 0x564   :  { %3080 = vmatprep.subr.bf16.mxu0 %v3520_v51 }
 0x567   :  { %3081 = vmatpush3.bf16.msra.mxu0 %v3521_v52 }
 0x568   :  { %3082 = vmatprep.subr.bf16.mxu0 %v3523_v53 }
 0x56b   :  { %3083 = vmatpush3.bf16.msra.mxu0 %v3524_v54 }
 0x56c   :  { %3084 = vmatprep.subr.bf16.mxu0 %v3526_v55 }
 0x56f   :  { %3085 = vmatpush3.bf16.msra.mxu0 %v3527_v56 }
 0x570   :  { %3101 = vmatprep.subr.bf16.mxu0 %v3529_v16 }
 0x5f9   :  { %v2002_v58 = vpop.f32.mrf.mxu1 }
 0x5fa   :  { %v2008_v59 = vadd.f32 %v2002_v58, %v193_v57 }
 0x5fb   :  { %v3283_v60 = vpop.f32.mrf.mxu1 }
 0x5fc   :  { %3567 = vtanh.f32 %v2008_v59 }
 0x5fd   :  { %v2005_v61 = vpop.f32.mrf.mxu1 }
 0x5ff   :  { %v3284_v62 = vpop.f32.mrf.mxu1 }
 0x609   :  { %v3568_v15 = vpop.eup %3567 }
 0x60a   :  { %v2010_v63 = vpack.c.bf16 %v3568_v15, %v3568_v15 }
 0x60c   :  { %3302 = vmatmul.mubr.bf16.vlgmr.msra.gmra.mxu1 %v2010_v63 }
 0x60d   :  { %3306 = vmatpush3.bf16.msra.mxu1 %v3507_v41  ;;  %3321 = vmatprep.mubr.bf16.mxu1 %v2475_v3 }
 0x60e   :  { %3307 = vmatprep.subr.bf16.mxu1 %v3510_v2 }
 0x611   :  { %3308 = vmatpush3.bf16.msra.mxu1 %v3510_v2 }
 0x612   :  { %v3055_v5 = vpop.f32.mrf.mxu0  ;;  %3309 = vmatprep.subr.bf16.mxu1 %v3513_v4 }
 0x614   :  { %v3056_v17 = vpop.f32.mrf.mxu0 }
 0x615   :  { %v3057_v6 = vadd.f32 %v3056_v17, %v3055_v5  ;;  %3310 = vmatpush3.bf16.msra.mxu1 %v3513_v4 }
 0x616   :  { %v3058_v7 = vpop.f32.mrf.mxu0  ;;  %3311 = vmatprep.subr.bf16.mxu1 %v3516_v44 }
 0x617   :  { %v1894_v9 = vadd.f32 %v3057_v6, %v3839_v25 }
 0x618   :  { %v3059_v10 = vpop.f32.mrf.mxu0 }
 0x619   :  { %3569 = vtanh.f32 %v1894_v9  ;;  %3312 = vmatpush3.bf16.msra.mxu1 %v3516_v44 }
 0x61a   :  { %3313 = vmatprep.subr.bf16.mxu1 %v3519_v8 }
 0x61d   :  { %3314 = vmatpush3.bf16.msra.mxu1 %v3519_v8 }
 0x61e   :  { %3315 = vmatprep.subr.bf16.mxu1 %v3522_v37 }
 0x621   :  { %3316 = vmatpush3.bf16.msra.mxu1 %v3522_v37 }
 0x622   :  { %3317 = vmatprep.subr.bf16.mxu1 %v3525_v21 }
 0x625   :  { %3318 = vmatpush3.bf16.msra.mxu1 %v3525_v21 }
 0x626   :  { %v3570_v12 = vpop.eup %3569  ;;  %3319 = vmatprep.subr.bf16.mxu1 %v3528_v11 }
 0x627   :  { %v2011_v13 = vpack.c.bf16 %v3570_v12, %v3570_v12  ;;  %v2477_v43 = vpack.c.bf16 %v3570_v12, %v3916_v32  ;;  %v3542_v32 = vld [vmem:[#allocation7 + $0x8] sm:$0xff]  }
 0x629   :  { %3320 = vmatpush3.bf16.msra.mxu1 %v3528_v11  ;;  %2172 = vmatprep.mubr.bf16.mxu0 %v2011_v13 }
 0x62a   :  { %2173 = vmatmul.mubr.bf16.vlgmr.msra.gmra.mxu0 %v2010_v63 }
 0x62b   :  { %3102 = vmatpush3.bf16.msra.mxu0 %v3530_v22 }
 0x62c   :  { %3322 = vmatmul.mubr.bf16.vlgmr.msra.gmra.mxu1 %v2476_v14  ;;  %3103 = vmatprep.subr.bf16.mxu0 %v3531_v23 }
 0x62d   :  { %3325 = vmatprep.mubr.bf16.mxu1 %v2477_v43 }
 0x62f   :  { %3104 = vmatpush3.bf16.msra.mxu0 %v3532_v24 }
 0x630   :  { %3105 = vmatprep.subr.bf16.mxu0 %v3533_v26 }
 0x633   :  { %3106 = vmatpush3.bf16.msra.mxu0 %v3534_v20 }
 0x634   :  { %3107 = vmatprep.subr.bf16.mxu0 %v3535_v27 }
 0x637   :  { %3108 = vmatpush3.bf16.msra.mxu0 %v3536_v28 }
 0x638   :  { %3109 = vmatprep.subr.bf16.mxu0 %v3537_v1 }
 0x63b   :  { %3110 = vmatpush3.bf16.msra.mxu0 %v3538_v49 }
 0x63c   :  { %3111 = vmatprep.subr.bf16.mxu0 %v3539_v29 }
 0x63f   :  { %3112 = vmatpush3.bf16.msra.mxu0 %v3540_v30 }
 0x640   :  { %3113 = vmatprep.subr.bf16.mxu0 %v3541_v31 }
 0x643   :  { %3114 = vmatpush3.bf16.msra.mxu0 %v3542_v32 }
 0x644   :  { %3115 = vmatprep.subr.bf16.mxu0 %v3543_v33 }
 0x647   :  { %3116 = vmatpush3.bf16.msra.mxu0 %v3544_v34 }
 0x6cc   :  { %v2283_v38 = vpop.f32.mrf.mxu1 }
 0x6cd   :  { %v2289_v39 = vadd.f32 %v2283_v38, %v196_v36 }
 0x6ce   :  { %v3303_v40 = vpop.f32.mrf.mxu1 }
 0x6cf   :  { %3571 = vtanh.f32 %v2289_v39 }
 0x6d0   :  { %v2286_v41 = vpop.f32.mrf.mxu1 }
 0x6d2   :  { %v3304_v42 = vpop.f32.mrf.mxu1 }
 0x6dc   :  { %v3572_v45 = vpop.eup %3571 }
 0x6dd   :  { %2464 = vst [vmem:[#allocation11] sm:$0xff] %v3572_v45  ;;  %v2291_v61 = vpack.c.bf16 %v3572_v45, %v3572_v45 }
 0x6ea   :  { %v3086_v46 = vpop.f32.mrf.mxu0 }
 0x6ec   :  { %v3323_v18 = vpop.f32.mrf.mxu1  ;;  %v3087_v48 = vpop.f32.mrf.mxu0 }
 0x6ed   :  { %v2593_v0 = vadd.f32 %v3323_v18, %v2861_v47  ;;  %v3088_v50 = vadd.f32 %v3087_v48, %v3086_v46 }
 0x6ee   :  { %v2584_v51 = vpop.f32.mrf.mxu1  ;;  %v3089_v52 = vpop.f32.mrf.mxu0 }
 0x6ef   :  { %2617 = vst [vmem:[#allocation10 + $0x10] sm:$0xff] %v2593_v0  ;;  %v2175_v19 = vadd.f32 %v3088_v50, %v3839_v25  ;;  %v2585_v53 = vadd.f32 %v2861_v47, %v2584_v51 }
 0x6f0   :  { %v3324_v54 = vpop.f32.mrf.mxu1  ;;  %v3090_v55 = vpop.f32.mrf.mxu0 }
 0x6f1   :  { %3573 = vtanh.f32 %v2175_v19  ;;  %2615 = vst [vmem:[#allocation10] sm:$0xff] %v2585_v53  ;;  %v2596_v56 = vadd.f32 %v3324_v54, %v2861_v47 }
 0x6f2   :  { %v2587_v57 = vpop.f32.mrf.mxu1 }
 0x6f3   :  { %2618 = vst [vmem:[#allocation10 + $0x18] sm:$0xff] %v2596_v56  ;;  %v2588_v58 = vadd.f32 %v2861_v47, %v2587_v57 }
 0x6f5   :  { %2616 = vst [vmem:[#allocation10 + $0x8] sm:$0xff] %v2588_v58 }
 0x6fe   :  { %v3574_v59 = vpop.eup %3573 }
 0x6ff   :  { %v2292_v60 = vpack.c.bf16 %v3574_v59, %v3574_v59 }
 0x701   :  { %2453 = vmatprep.mubr.bf16.mxu0 %v2292_v60 }
 0x702   :  { %2454 = vmatmul.mubr.bf16.vlgmr.msra.gmra.mxu0 %v2291_v61 }
 0x7c2   :  { %v3117_v62 = vpop.f32.mrf.mxu0 }
 0x7c4   :  { %v3118_v15 = vpop.f32.mrf.mxu0 }
 0x7c5   :  { %v3119_v63 = vadd.f32 %v3118_v15, %v3117_v62 }
 0x7c6   :  { %v3120_v2 = vpop.f32.mrf.mxu0 }
 0x7c7   :  { %v2456_v3 = vadd.f32 %v3119_v63, %v3839_v25 }
 0x7c8   :  { %v3121_v4 = vpop.f32.mrf.mxu0 }
 0x7c9   :  { %3575 = vtanh.f32 %v2456_v3 }
 0x7d6   :  { %v3576_v5 = vpop.eup %3575 }
 0x7d7   :  { %2466 = vst [vmem:[#allocation11 + $0x8] sm:$0xff] %v3576_v5  ;;  %v2478_v44 = vpack.c.bf16 %v3576_v5, %v3574_v59 }
 0x7d9   :  { %3326 = vmatmul.mubr.bf16.gmra.mxu1 %v2478_v44 }
 0x7da   :  { %3649 = shalt.err (!%p3646_p5)
}
 0x7db   :  { %s3694_s26 = smov 128   ;;  %s3695_s27 = smov 8  }
 0x7dc   :  { %2646 = dma.vmem_to_hbm [thread:$0]  %s2641_s8, 256, %s3956_s10, [#allocation12], %s3694_s26, %s3694_s26, %s3695_s27  }
 0x7dd   :  { %s3696_s4 = smov [#allocation10]  }
 0x7de   :  { %s2628_s29 = sshll.u32 %s3696_s4, 4  ;;  %s2629_s29 = int_to_ptr.vmem [resolvable:$true] %s2628_s29 }
 0x7df   :  { %s3658_s7 = scalar_lea.vmem %s2629_s29, 1024  ;;  %p3663_p7 = scmp.lt.s32.totalorder %s2629_s29, %s2629_s29 }
 0x7e0   :  { %p3659_p6 = scmp.ne.s32.totalorder %s2629_s29, %s3658_s7  ;;  %p3664_p8 = scmp.lt.s32.totalorder %s3658_s7, %s3658_s7 }
 0x7e2   :  { %p3665_p9 = por %p3664_p8, %p3663_p7 }
 0x7e4   :  { %p3666_p10 = pnand %p3665_p9, %p3659_p6 }
 0x899   :  { %v3327_v25 = vpop.f32.mrf.mxu1 }
 0x89a   :  { %v2609_v17 = vadd.f32 %v3327_v25, %v2861_v47 }
 0x89b   :  { %v2600_v6 = vpop.f32.mrf.mxu1 }
 0x89c   :  { %2621 = vst [vmem:[#allocation10 + $0x30] sm:$0xff] %v2609_v17  ;;  %v2601_v7 = vadd.f32 %v2861_v47, %v2600_v6 }
 0x89d   :  { %v3328_v8 = vpop.f32.mrf.mxu1 }
 0x89e   :  { %2619 = vst [vmem:[#allocation10 + $0x20] sm:$0xff] %v2601_v7  ;;  %v2612_v9 = vadd.f32 %v3328_v8, %v2861_v47 }
 0x89f   :  { %v2603_v10 = vpop.f32.mrf.mxu1 }
 0x8a0   :  { %2622 = vst [vmem:[#allocation10 + $0x38] sm:$0xff] %v2612_v9  ;;  %v2604_v37 = vadd.f32 %v2861_v47, %v2603_v10 }
 0x8a2   :  { %2620 = vst [vmem:[#allocation10 + $0x28] sm:$0xff] %v2604_v37 }
 0x8a3   :  { %3669 = shalt.err (!%p3666_p10)
}
 0x8a4   :  { %2634 = dma.vmem_to_hbm [thread:$0]  %s2629_s29, 1024, %s3955_s9, [#allocation6], %s3694_s26, %s3694_s26, %s3695_s27  }
 0x8a5   :  { %3682 = dma.done.wait [#allocation6], 1024  }
 0x8a6   :  { %3683 = vsyncadd [#allocation6], 4294966272 }
 0x8a7   :  { %3684 = dma.done.wait [#allocation12], 256  }
 0x8a8   :  { %3685 = vsyncadd [#allocation12], 4294967040 }
 0x8a9   :  { %2653 = vsyncpa [#allocation5], 1 }
 0x8aa   :  { %2654 = vsyncpa [#allocation8], 1 }
 0x8ab   :  { %2655 = vsyncpa [#allocation6], 1 }
 0x8ac   :  { %2656 = vsyncpa [#allocation12], 1 }

</bundles_post_ra>
